<compile_context>
chip_gen: v7x
topology: tpu7x:2x2x1
jax: 0.10.0
libtpu: 0.0.40
codegen_flags: <defaults>
</compile_context>

<pallas_src>
import jax
import jax.numpy as jnp
from jax.experimental import pallas as pl
from jax.experimental.pallas import tpu as pltpu

D_STRUCT = 128            # f_struct feature dim
D_LLM = 128               # f_llm feature dim
D_H1 = 512
D_H2 = 256
D_OUT = 128               # dim

_SPLIT_MIN_B = 512        # below this, a single full-batch tile beats splitting
_TILE_B_CAP = 2048        # rows per tile cap (VMEM comfortable on all generations)


def _round_up(x, m):
    return ((x + m - 1) // m) * m


def _default_fuse_fc1():
    """True on chips whose MXU contraction depth is 256 (v6e / v7x): a single K=256
    fc1 matmul fills the systolic array; on 128-deep MXUs (<= v5) keep the split form."""
    try:
        kind = jax.devices()[0].device_kind.lower()
    except Exception:
        return True
    for old in ("v2", "v3", "v4", "v5"):
        if old in kind:
            return False
    return True


def _pick_tile_b(B, cap):
    """Batch-tile selection (no padding anywhere):
      * B < 512: one full-batch tile. Per-step work at small tiles (~0.1 us) is dwarfed
        by the ~0.35 us grid-step overhead, so splitting is pure overhead; tile_b == B
        also sidesteps the (8,128) block constraint for batches not divisible by 8.
      * B >= 512: ~2 equal tiles (keeps both v7x TensorCores busy), capped at `cap`
        rows so very large batches get more pipeline steps.
    """
    if B < _SPLIT_MIN_B:
        return B
    half = _round_up(pl.cdiv(B, 2), 8)
    return max(8, min(cap, half))


def _mlp_tail(h1, w2_ref, b2_ref, w3_ref, b3_ref):
    """relu(fc2) -> fc3 in bf16-matmul / f32-accumulate."""
    h2 = jnp.maximum(
        jnp.dot(h1.astype(jnp.bfloat16), w2_ref[...],
                preferred_element_type=jnp.float32) + b2_ref[...], 0.0)
    return jnp.dot(h2.astype(jnp.bfloat16), w3_ref[...],
                   preferred_element_type=jnp.float32) + b3_ref[...]


def _fused_fc1_kernel(fs_ref, fl_ref, w1_ref, b1_ref, w2_ref, b2_ref,
                      w3_ref, b3_ref, out_ref):
    """v6e/v7x path: lane-aligned in-kernel concat + one K=256 matmul for fc1."""
    fs = fs_ref[...]                                  # (TB, 128) f32
    fl = fl_ref[...]                                  # (TB, 128) f32
    x = jnp.concatenate([fs.astype(jnp.bfloat16), fl.astype(jnp.bfloat16)], axis=-1)
    h1 = jnp.maximum(
        jnp.dot(x, w1_ref[...], preferred_element_type=jnp.float32) + b1_ref[...], 0.0)
    y = _mlp_tail(h1, w2_ref, b2_ref, w3_ref, b3_ref)
    # TODO(synk): nn.Dropout(0.1) is identity at inference; training-mode dropout not modeled.
    out_ref[...] = (y * fl + fs).astype(out_ref.dtype)


def _split_fc1_kernel(fs_ref, fl_ref, w1a_ref, w1b_ref, b1_ref, w2_ref, b2_ref,
                      w3_ref, b3_ref, out_ref):
    """v5e path: two K=128 matmuls (MXU already full at K=128); no concat needed."""
    fs = fs_ref[...]
    fl = fl_ref[...]
    h1 = jnp.maximum(
        jnp.dot(fs.astype(jnp.bfloat16), w1a_ref[...], preferred_element_type=jnp.float32)
        + jnp.dot(fl.astype(jnp.bfloat16), w1b_ref[...], preferred_element_type=jnp.float32)
        + b1_ref[...], 0.0)
    y = _mlp_tail(h1, w2_ref, b2_ref, w3_ref, b3_ref)
    out_ref[...] = (y * fl + fs).astype(out_ref.dtype)


def _broadcast_fs_kernel(fs_ref, fl_ref, w1b_ref, b1eff_ref, w2_ref, b2_ref,
                         w3_ref, b3_ref, out_ref):
    """Broadcast f_struct: its fc1 contribution is pre-folded into b1eff, so each grid
    step does only the f_llm matmul; fs (1,128) is broadcast in the residual add."""
    fs = fs_ref[...]                                  # (1, 128) f32
    fl = fl_ref[...]                                  # (TB, 128) f32
    h1 = jnp.maximum(
        jnp.dot(fl.astype(jnp.bfloat16), w1b_ref[...], preferred_element_type=jnp.float32)
        + b1eff_ref[...], 0.0)
    y = _mlp_tail(h1, w2_ref, b2_ref, w3_ref, b3_ref)
    out_ref[...] = (y * fl + fs).astype(out_ref.dtype)


def feature_fusion(f_struct, f_llm, params, *, tile_b=None, tile_b_cap=_TILE_B_CAP,
                   fuse_fc1=None, out_dtype=jnp.float32):
    """f_struct: (B,128), (1,128) or (128,); f_llm: (B,128) or (128,). Returns (B,128)."""
    if f_struct.ndim == 1:
        f_struct = f_struct[None, :]
    if f_llm.ndim == 1:
        f_llm = f_llm[None, :]

    B = f_llm.shape[0]
    broadcast_fs = f_struct.shape[0] != B
    if broadcast_fs:
        assert f_struct.shape[0] == 1, "f_struct batch must be 1 or match f_llm batch"

    w1, b1, w2, b2, w3, b3 = params                   # w1: (256, 512) bf16, biases f32

    if fuse_fc1 is None:
        fuse_fc1 = _default_fuse_fc1()

    if tile_b is None:
        tile_b = _pick_tile_b(B, tile_b_cap)
    else:
        tile_b = min(B, _round_up(max(tile_b, 8), 8))
    grid = (pl.cdiv(B, tile_b),)                      # ragged last block is masked; no pad

    full = lambda shape: pl.BlockSpec(shape, lambda i: (0, 0))
    batch = lambda d: pl.BlockSpec((tile_b, d), lambda i: (i, 0))

    if broadcast_fs:
        # Fold fs @ W1[:128] + b1 into an effective bias once, outside the kernel.
        b1_eff = (jnp.dot(f_struct.astype(jnp.bfloat16), w1[:D_STRUCT],
                          preferred_element_type=jnp.float32) + b1)
        kernel = _broadcast_fs_kernel
        operands = (f_struct, f_llm, w1[D_STRUCT:], b1_eff, w2, b2, w3, b3)
        fc1_specs = [full((D_LLM, D_H1)), full((1, D_H1))]
        fs_spec = full((1, D_STRUCT))
        n_w1 = D_LLM * D_H1
    elif fuse_fc1:
        kernel = _fused_fc1_kernel
        operands = (f_struct, f_llm, w1, b1, w2, b2, w3, b3)
        fc1_specs = [full((D_STRUCT + D_LLM, D_H1)), full((1, D_H1))]
        fs_spec = batch(D_STRUCT)
        n_w1 = (D_STRUCT + D_LLM) * D_H1
    else:
        kernel = _split_fc1_kernel
        operands = (f_struct, f_llm, w1[:D_STRUCT], w1[D_STRUCT:], b1, w2, b2, w3, b3)
        fc1_specs = [full((D_STRUCT, D_H1)), full((D_LLM, D_H1)), full((1, D_H1))]
        fs_spec = batch(D_STRUCT)
        n_w1 = (D_STRUCT + D_LLM) * D_H1

    in_specs = [fs_spec, batch(D_LLM), *fc1_specs,
                full((D_H1, D_H2)), full((1, D_H2)),
                full((D_H2, D_OUT)), full((1, D_OUT))]

    # Advisory cost estimate (weights counted once; their block index never changes).
    n_weight = n_w1 + D_H1 * D_H2 + D_H2 * D_OUT
    flops = 2 * B * n_weight
    bytes_accessed = (f_struct.size * f_struct.dtype.itemsize
                      + f_llm.size * f_llm.dtype.itemsize
                      + n_weight * 2                                   # bf16 weights
                      + (D_H1 + D_H2 + D_OUT) * 4                      # f32 biases
                      + B * D_OUT * jnp.dtype(out_dtype).itemsize)     # output
    cost = pl.CostEstimate(flops=int(flops), transcendentals=0,
                           bytes_accessed=int(bytes_accessed))

    compiler_kwargs = dict(dimension_semantics=("parallel",))
    if tile_b > 1024:
        # >1024-row tiles exceed v5e's 16 MiB default scoped-VMEM budget; 40 MiB covers
        # tile_b=2048 double-buffered with headroom on every chip (v7x physical = 64 MiB).
        compiler_kwargs["vmem_limit_bytes"] = 40 * 1024 * 1024

    return pl.pallas_call(
        kernel,
        out_shape=jax.ShapeDtypeStruct((B, D_OUT), out_dtype),
        grid_spec=pltpu.PrefetchScalarGridSpec(
            num_scalar_prefetch=0,
            grid=grid,
            in_specs=in_specs,
            out_specs=batch(D_OUT),
        ),
        compiler_params=pltpu.CompilerParams(**compiler_kwargs),
        cost_estimate=cost,
    )(*operands)


def init_params(key):
    """Deterministic synthetic params matching nn.Linear(256,512)/(512,256)/(256,dim).

    Stored transposed ([in, out]) so the kernel computes x @ W + b; weights bf16
    (MXU inputs), biases f32 as (1, out) rows. w1 is kept whole; the wrapper slices
    it into struct/llm halves when the split (v5e) or broadcast path is used.
    """
    ks = jax.random.split(key, 6)

    def lin(kw, kb, fan_in, fan_out):
        bound = 1.0 / jnp.sqrt(fan_in)
        w = jax.random.uniform(kw, (fan_out, fan_in), jnp.float32, -bound, bound)
        b = jax.random.uniform(kb, (fan_out,), jnp.float32, -bound, bound)
        return w.T.astype(jnp.bfloat16), b[None, :]

    w1, b1 = lin(ks[0], ks[1], D_STRUCT + D_LLM, D_H1)
    w2, b2 = lin(ks[2], ks[3], D_H1, D_H2)
    w3, b3 = lin(ks[4], ks[5], D_H2, D_OUT)
    return (w1, b1, w2, b2, w3, b3)


def feature_fusion_ref(f_struct, f_llm, params):
    """Pure-JAX reference mirroring the kernel's bf16-matmul / f32-accumulate semantics
    (eval-mode dropout = identity)."""
    if f_struct.ndim == 1:
        f_struct = f_struct[None, :]
    if f_llm.ndim == 1:
        f_llm = f_llm[None, :]
    if f_struct.shape[0] != f_llm.shape[0]:
        f_struct = jnp.broadcast_to(f_struct, f_llm.shape)
    w1, b1, w2, b2, w3, b3 = params
    bf = jnp.bfloat16
    x = jnp.concatenate([f_struct, f_llm], axis=-1).astype(bf)
    h1 = jax.nn.relu(jnp.dot(x, w1, preferred_element_type=jnp.float32) + b1)
    h2 = jax.nn.relu(jnp.dot(h1.astype(bf), w2, preferred_element_type=jnp.float32) + b2)
    y = jnp.dot(h2.astype(bf), w3, preferred_element_type=jnp.float32) + b3
    return y * f_llm + f_struct


if __name__ == "__main__":
    key = jax.random.PRNGKey(0)
    kp, ks, kl = jax.random.split(key, 3)
    params = init_params(kp)

    B = 256
    f_struct = jax.random.normal(ks, (B, D_STRUCT), jnp.float32)
    f_llm = jax.random.normal(kl, (B, D_LLM), jnp.float32)
    ref = feature_fusion_ref(f_struct, f_llm, params)

    # Auto path (single full-batch tile at this size).
    out = jax.block_until_ready(feature_fusion(f_struct, f_llm, params))
    assert out.shape == (B, D_OUT)
    assert jnp.allclose(out, ref, atol=1e-2, rtol=1e-2), "mismatch vs reference"

    # Ragged batch + explicit small tile: exercises the pad-free masked last block
    # and a multi-step grid (the two tiles can land on separate v7x TensorCores).
    Br = 200
    out_r = jax.block_until_ready(
        feature_fusion(f_struct[:Br], f_llm[:Br], params, tile_b=128))
    assert out_r.shape == (Br, D_OUT)
    assert jnp.allclose(out_r, ref[:Br], atol=1e-2, rtol=1e-2), "mismatch (ragged path)"

    # Broadcast path: single f_struct row expanded over the batch; its fc1 contribution
    # is folded into the bias outside the kernel.
    out_b = jax.block_until_ready(feature_fusion(f_struct[:1], f_llm, params))
    ref_b = feature_fusion_ref(f_struct[:1], f_llm, params)
    assert jnp.allclose(out_b, ref_b, atol=1e-2, rtol=1e-2), "mismatch (broadcast path)"

    # Split-fc1 variant (the v5e form) — keep it covered regardless of the chip we're on.
    out_s = jax.block_until_ready(
        feature_fusion(f_struct, f_llm, params, fuse_fc1=False))
    assert jnp.allclose(out_s, ref, atol=1e-2, rtol=1e-2), "mismatch (split-fc1 path)"

    print("KERNEL_OK")
</pallas_src>

<mosaic_0001>
module attributes {stable_mosaic.version = 11 : i64} {
  func.func @_fused_fc1_kernel(%arg0: i32, %arg1: memref<256x128xf32, #tpu.memory_space<vmem>>, %arg2: memref<256x128xf32, #tpu.memory_space<vmem>>, %arg3: memref<256x512xbf16, #tpu.memory_space<vmem>>, %arg4: memref<1x512xf32, #tpu.memory_space<vmem>>, %arg5: memref<512x256xbf16, #tpu.memory_space<vmem>>, %arg6: memref<1x256xf32, #tpu.memory_space<vmem>>, %arg7: memref<256x128xbf16, #tpu.memory_space<vmem>>, %arg8: memref<1x128xf32, #tpu.memory_space<vmem>>, %arg9: memref<256x128xf32, #tpu.memory_space<vmem>>) attributes {dimension_semantics = [#tpu.dimension_semantics<parallel>], iteration_bounds = array<i64: 1>, scalar_prefetch = 0 : i64, scratch_operands = 0 : i64, tpu.core_type = #tpu.core_type<tc>, window_params = [{transform_indices = @transform_0, window_bounds = array<i64: 256, 128>}, {transform_indices = @transform_1, window_bounds = array<i64: 256, 128>}, {pipeline_mode = #tpu.pipeline_mode<synchronous>, transform_indices = @transform_2, window_bounds = array<i64: 256, 512>}, {pipeline_mode = #tpu.pipeline_mode<synchronous>, transform_indices = @transform_3, window_bounds = array<i64: 1, 512>}, {pipeline_mode = #tpu.pipeline_mode<synchronous>, transform_indices = @transform_4, window_bounds = array<i64: 512, 256>}, {pipeline_mode = #tpu.pipeline_mode<synchronous>, transform_indices = @transform_5, window_bounds = array<i64: 1, 256>}, {pipeline_mode = #tpu.pipeline_mode<synchronous>, transform_indices = @transform_6, window_bounds = array<i64: 256, 128>}, {pipeline_mode = #tpu.pipeline_mode<synchronous>, transform_indices = @transform_7, window_bounds = array<i64: 1, 128>}, {transform_indices = @transform_8, window_bounds = array<i64: 256, 128>}]} {
    %c0 = arith.constant 0 : index
    %c0_0 = arith.constant 0 : index
    %0 = vector.load %arg1[%c0, %c0_0] : memref<256x128xf32, #tpu.memory_space<vmem>>, vector<256x128xf32>
    %c0_1 = arith.constant 0 : index
    %c0_2 = arith.constant 0 : index
    %1 = vector.load %arg2[%c0_1, %c0_2] : memref<256x128xf32, #tpu.memory_space<vmem>>, vector<256x128xf32>
    %2 = arith.truncf %0 : vector<256x128xf32> to vector<256x128xbf16>
    %3 = arith.truncf %1 : vector<256x128xf32> to vector<256x128xbf16>
    %4 = tpu.concatenate %2, %3 in 1 : vector<256x128xbf16>, vector<256x128xbf16> -> vector<256x256xbf16>
    %c0_3 = arith.constant 0 : index
    %c0_4 = arith.constant 0 : index
    %5 = vector.load %arg3[%c0_3, %c0_4] : memref<256x512xbf16, #tpu.memory_space<vmem>>, vector<256x512xbf16>
    %cst = arith.constant dense<0.000000e+00> : vector<256x512xf32>
    %6 = tpu.matmul %4, %5, %cst {dimension_numbers = #tpu.dot_dimension_numbers<[1], [0], [0], [1], [0, 0, 1, 1], [], []>} : vector<256x256xbf16>, vector<256x512xbf16>, vector<256x512xf32> -> vector<256x512xf32>
    %c0_5 = arith.constant 0 : index
    %c0_6 = arith.constant 0 : index
    %7 = vector.load %arg4[%c0_5, %c0_6] : memref<1x512xf32, #tpu.memory_space<vmem>>, vector<1x512xf32>
    %8 = vector.broadcast %7 : vector<1x512xf32> to vector<256x512xf32>
    %9 = arith.addf %6, %8 : vector<256x512xf32>
    %cst_7 = arith.constant 0.000000e+00 : f32
    %10 = vector.broadcast %cst_7 : f32 to vector<256x512xf32>
    %11 = arith.maximumf %9, %10 : vector<256x512xf32>
    %12 = arith.truncf %11 : vector<256x512xf32> to vector<256x512xbf16>
    %c0_8 = arith.constant 0 : index
    %c0_9 = arith.constant 0 : index
    %13 = vector.load %arg5[%c0_8, %c0_9] : memref<512x256xbf16, #tpu.memory_space<vmem>>, vector<512x256xbf16>
    %cst_10 = arith.constant dense<0.000000e+00> : vector<256x256xf32>
    %14 = tpu.matmul %12, %13, %cst_10 {dimension_numbers = #tpu.dot_dimension_numbers<[1], [0], [0], [1], [0, 0, 1, 1], [], []>} : vector<256x512xbf16>, vector<512x256xbf16>, vector<256x256xf32> -> vector<256x256xf32>
    %c0_11 = arith.constant 0 : index
    %c0_12 = arith.constant 0 : index
    %15 = vector.load %arg6[%c0_11, %c0_12] : memref<1x256xf32, #tpu.memory_space<vmem>>, vector<1x256xf32>
    %16 = vector.broadcast %15 : vector<1x256xf32> to vector<256x256xf32>
    %17 = arith.addf %14, %16 : vector<256x256xf32>
    %cst_13 = arith.constant 0.000000e+00 : f32
    %18 = vector.broadcast %cst_13 : f32 to vector<256x256xf32>
    %19 = arith.maximumf %17, %18 : vector<256x256xf32>
    %20 = arith.truncf %19 : vector<256x256xf32> to vector<256x256xbf16>
    %c0_14 = arith.constant 0 : index
    %c0_15 = arith.constant 0 : index
    %21 = vector.load %arg7[%c0_14, %c0_15] : memref<256x128xbf16, #tpu.memory_space<vmem>>, vector<256x128xbf16>
    %cst_16 = arith.constant dense<0.000000e+00> : vector<256x128xf32>
    %22 = tpu.matmul %20, %21, %cst_16 {dimension_numbers = #tpu.dot_dimension_numbers<[1], [0], [0], [1], [0, 0, 1, 1], [], []>} : vector<256x256xbf16>, vector<256x128xbf16>, vector<256x128xf32> -> vector<256x128xf32>
    %c0_17 = arith.constant 0 : index
    %c0_18 = arith.constant 0 : index
    %23 = vector.load %arg8[%c0_17, %c0_18] : memref<1x128xf32, #tpu.memory_space<vmem>>, vector<1x128xf32>
    %24 = vector.broadcast %23 : vector<1x128xf32> to vector<256x128xf32>
    %25 = arith.addf %22, %24 : vector<256x128xf32>
    %26 = arith.mulf %25, %1 : vector<256x128xf32>
    %27 = arith.addf %26, %0 : vector<256x128xf32>
    %c0_19 = arith.constant 0 : index
    %c0_20 = arith.constant 0 : index
    %28 = vector.load %arg9[%c0_19, %c0_20] : memref<256x128xf32, #tpu.memory_space<vmem>>, vector<256x128xf32>
    tpu.vector_store %arg9[%c0_19, %c0_20], %27 {strides = array<i32>} : memref<256x128xf32, #tpu.memory_space<vmem>>, vector<256x128xf32>,
    return
  }
  func.func @transform_0(%arg0: i32) -> (i32, i32) {
    %c0_i32 = arith.constant 0 : i32
    %c0_i32_0 = arith.constant 0 : i32
    return %arg0, %c0_i32 : i32, i32
  }
  func.func @transform_1(%arg0: i32) -> (i32, i32) {
    %c0_i32 = arith.constant 0 : i32
    %c0_i32_0 = arith.constant 0 : i32
    return %arg0, %c0_i32 : i32, i32
  }
  func.func @transform_2(%arg0: i32) -> (i32, i32) {
    %c0_i32 = arith.constant 0 : i32
    %c0_i32_0 = arith.constant 0 : i32
    %c0_i32_1 = arith.constant 0 : i32
    return %c0_i32, %c0_i32_0 : i32, i32
  }
  func.func @transform_3(%arg0: i32) -> (i32, i32) {
    %c0_i32 = arith.constant 0 : i32
    %c0_i32_0 = arith.constant 0 : i32
    %c0_i32_1 = arith.constant 0 : i32
    return %c0_i32, %c0_i32_0 : i32, i32
  }
  func.func @transform_4(%arg0: i32) -> (i32, i32) {
    %c0_i32 = arith.constant 0 : i32
    %c0_i32_0 = arith.constant 0 : i32
    %c0_i32_1 = arith.constant 0 : i32
    return %c0_i32, %c0_i32_0 : i32, i32
  }
  func.func @transform_5(%arg0: i32) -> (i32, i32) {
    %c0_i32 = arith.constant 0 : i32
    %c0_i32_0 = arith.constant 0 : i32
    %c0_i32_1 = arith.constant 0 : i32
    return %c0_i32, %c0_i32_0 : i32, i32
  }
  func.func @transform_6(%arg0: i32) -> (i32, i32) {
    %c0_i32 = arith.constant 0 : i32
    %c0_i32_0 = arith.constant 0 : i32
    %c0_i32_1 = arith.constant 0 : i32
    return %c0_i32, %c0_i32_0 : i32, i32
  }
  func.func @transform_7(%arg0: i32) -> (i32, i32) {
    %c0_i32 = arith.constant 0 : i32
    %c0_i32_0 = arith.constant 0 : i32
    %c0_i32_1 = arith.constant 0 : i32
    return %c0_i32, %c0_i32_0 : i32, i32
  }
  func.func @transform_8(%arg0: i32) -> (i32, i32) {
    %c0_i32 = arith.constant 0 : i32
    %c0_i32_0 = arith.constant 0 : i32
    return %arg0, %c0_i32 : i32, i32
  }
}

</mosaic_0001>

<bundles_post_ra>
// kernel: tpu_custom_call.1
= control target key start
LH: loop header
LB: loop body
LE: loop exit
PB: predicated region body
PF: predicated region fallthrough
CT: control target
= control target key end

     0   :  { %13 = vsyncpa [#allocation3], 0  ;;  %s3975_s0 = inlined_call_operand.hbm [shape: f32[256,128], index: 0, kind: input, shape index: {}]   ;;  %s3976_s1 = inlined_call_operand.hbm [shape: f32[256,128], index: 1, kind: input, shape index: {}]   ;;  %s3977_s2 = inlined_call_operand.hbm [shape: bf16[256,512], index: 2, kind: input, shape index: {}]   ;;  %s3978_s3 = inlined_call_operand.vmem [shape: f32[1,512], index: 3, kind: input, shape index: {}]   ;;  %s3979_s4 = inlined_call_operand.hbm [shape: bf16[512,256], index: 4, kind: input, shape index: {}]   ;;  %s3980_s5 = inlined_call_operand.vmem [shape: f32[1,256], index: 5, kind: input, shape index: {}]   ;;  %s3981_s6 = inlined_call_operand.hbm [shape: bf16[256,128], index: 6, kind: input, shape index: {}]   ;;  %s3982_s7 = inlined_call_operand.vmem [shape: f32[1,128], index: 7, kind: input, shape index: {}]   ;;  %s3983_s8 = inlined_call_operand.hbm [shape: f32[256,128], index: 8, kind: output, shape index: {}]  }
   0x1   :  { %14 = vsyncpa [#allocation6], 0 }
   0x2   :  { %15 = vsyncpa [#allocation9], 0 }
   0x3   :  { %16 = vsyncpa [#allocation4], 0  ;;  %s3309_s27 = smov [#allocation5]   ;;  %s3310_s29 = smov [#allocation8]  }
   0x4   :  { %s34_s28 = sshll.u32 %s3309_s27, 4  ;;  %s60_s30 = sshll.u32 %s3310_s29, 4  ;;  %s35_s28 = int_to_ptr.vmem [resolvable:$true] %s34_s28  ;;  %s3366_s30 = int_to_ptr.vmem [resolvable:$true] %s60_s30 }
   0x5   :  { %s3169_s11 = scalar_lea.hbm %s3976_s1, 4096 }
   0x6   :  { %p3170_p0 = scmp.ne.s32.totalorder %s3976_s1, %s3169_s11  ;;  %p3173_p1 = scmp.lt.u32.totalorder %s3169_s11, %s3976_s1 }
   0x8   :  { %p3175_p2 = pnand %p3173_p1, %p3170_p0 }
   0xa   :  { %3178 = shalt.err (!%p3175_p2)
}
   0xb   :  { %s3179_s16 = scalar_lea.vmem %s35_s28, 4096  ;;  %p3184_p4 = scmp.lt.s32.totalorder %s35_s28, %s35_s28 }
   0xc   :  { %p3180_p3 = scmp.ne.s32.totalorder %s35_s28, %s3179_s16  ;;  %p3185_p5 = scmp.lt.s32.totalorder %s3179_s16, %s3179_s16 }
   0xe   :  { %p3186_p6 = por %p3185_p5, %p3184_p4 }
  0x10   :  { %p3187_p7 = pnand %p3186_p6, %p3180_p3 }
  0x12   :  { %3190 = shalt.err (!%p3187_p7)
}
  0x13   :  { %s3311_s17 = smov 128   ;;  %s3312_s18 = smov 8  }
  0x14   :  { %40 = dma.hbm_to_vmem [thread:$0]  %s3976_s1, 4096, %s35_s28, [#allocation6], %s3311_s17, %s3311_s17, %s3312_s18  }
  0x15   :  { %s3191_s23 = scalar_lea.hbm %s3979_s4, 8192 }
  0x16   :  { %p3192_p8 = scmp.ne.s32.totalorder %s3979_s4, %s3191_s23  ;;  %p3195_p9 = scmp.lt.u32.totalorder %s3191_s23, %s3979_s4 }
  0x18   :  { %p3197_p10 = pnand %p3195_p9, %p3192_p8 }
  0x1a   :  { %3200 = shalt.err (!%p3197_p10)
}
  0x1b   :  { %s3201_s29 = scalar_lea.vmem %s3366_s30, 8192  ;;  %p3206_p12 = scmp.lt.s32.totalorder %s3366_s30, %s3366_s30 }
  0x1c   :  { %p3202_p11 = scmp.ne.s32.totalorder %s3366_s30, %s3201_s29  ;;  %p3207_p13 = scmp.lt.s32.totalorder %s3201_s29, %s3201_s29 }
  0x1e   :  { %p3208_p0 = por %p3207_p13, %p3206_p12 }
  0x20   :  { %p3209_p1 = pnand %p3208_p0, %p3202_p11 }
  0x22   :  { %3212 = shalt.err (!%p3209_p1)
}
  0x23   :  { %66 = dma.hbm_to_vmem [thread:$0]  %s3979_s4, 8192, %s3366_s30, [#allocation9], %s3311_s17, %s3311_s17, %s3312_s18  }
  0x24   :  { %s3313_s9 = smov [#allocation2]   ;;  %s3314_s11 = smov [#allocation7]  }
  0x25   :  { %s22_s10 = sshll.u32 %s3313_s9, 4  ;;  %s46_s12 = sshll.u32 %s3314_s11, 4  ;;  %s23_s10 = int_to_ptr.vmem [resolvable:$true] %s22_s10  ;;  %s3403_s12 = int_to_ptr.vmem [resolvable:$true] %s46_s12 }
  0x26   :  { %s3213_s15 = scalar_lea.hbm %s3975_s0, 4096 }
  0x27   :  { %p3214_p2 = scmp.ne.s32.totalorder %s3975_s0, %s3213_s15  ;;  %p3217_p3 = scmp.lt.u32.totalorder %s3213_s15, %s3975_s0 }
  0x29   :  { %p3219_p4 = pnand %p3217_p3, %p3214_p2 }
  0x2b   :  { %3222 = shalt.err (!%p3219_p4)
}
  0x2c   :  { %s3223_s4 = scalar_lea.vmem %s23_s10, 4096  ;;  %p3228_p6 = scmp.lt.s32.totalorder %s23_s10, %s23_s10 }
  0x2d   :  { %p3224_p5 = scmp.ne.s32.totalorder %s23_s10, %s3223_s4  ;;  %p3229_p7 = scmp.lt.s32.totalorder %s3223_s4, %s3223_s4 }
  0x2f   :  { %p3230_p8 = por %p3229_p7, %p3228_p6 }
  0x31   :  { %p3231_p9 = pnand %p3230_p8, %p3224_p5 }
  0x33   :  { %3234 = shalt.err (!%p3231_p9)
}
  0x34   :  { %28 = dma.hbm_to_vmem [thread:$0]  %s3975_s0, 4096, %s23_s10, [#allocation3], %s3311_s17, %s3311_s17, %s3312_s18  }
  0x35   :  { %s3235_s25 = scalar_lea.hbm %s3977_s2, 8192 }
  0x36   :  { %p3236_p10 = scmp.ne.s32.totalorder %s3977_s2, %s3235_s25  ;;  %p3239_p11 = scmp.lt.u32.totalorder %s3235_s25, %s3977_s2 }
  0x38   :  { %p3241_p12 = pnand %p3239_p11, %p3236_p10 }
  0x3a   :  { %3244 = shalt.err (!%p3241_p12)
}
  0x3b   :  { %s3245_s28 = scalar_lea.vmem %s3403_s12, 8192  ;;  %p3250_p0 = scmp.lt.s32.totalorder %s3403_s12, %s3403_s12 }
  0x3c   :  { %p3246_p13 = scmp.ne.s32.totalorder %s3403_s12, %s3245_s28  ;;  %p3251_p1 = scmp.lt.s32.totalorder %s3245_s28, %s3245_s28 }
  0x3e   :  { %p3252_p2 = por %p3251_p1, %p3250_p0 }
  0x40   :  { %p3253_p3 = pnand %p3252_p2, %p3246_p13 }
  0x42   :  { %3256 = shalt.err (!%p3253_p3)
}
  0x43   :  { %s3315_s0 = smov 256   ;;  %s3316_s9 = smov 16  }
  0x44   :  { %52 = dma.hbm_to_vmem [thread:$0]  %s3977_s2, 8192, %s3403_s12, [#allocation6], %s3315_s0, %s3315_s0, %s3316_s9  }
  0x45   :  { %s3317_s13 = smov [#allocation10]   ;;  %s3257_s19 = scalar_lea.hbm %s3981_s6, 2048 }
  0x46   :  { %s74_s14 = sshll.u32 %s3317_s13, 4  ;;  %p3258_p4 = scmp.ne.s32.totalorder %s3981_s6, %s3257_s19  ;;  %s75_s14 = int_to_ptr.vmem [resolvable:$true] %s74_s14 }
  0x47   :  { %p3261_p5 = scmp.lt.u32.totalorder %s3257_s19, %s3981_s6 }
  0x49   :  { %p3263_p6 = pnand %p3261_p5, %p3258_p4 }
  0x4b   :  { %3266 = shalt.err (!%p3263_p6)
}
  0x4c   :  { %s3267_s22 = scalar_lea.vmem %s75_s14, 2048  ;;  %p3272_p8 = scmp.lt.s32.totalorder %s75_s14, %s75_s14 }
  0x4d   :  { %p3268_p7 = scmp.ne.s32.totalorder %s75_s14, %s3267_s22  ;;  %p3273_p9 = scmp.lt.s32.totalorder %s3267_s22, %s3267_s22 }
  0x4f   :  { %p3274_p10 = por %p3273_p9, %p3272_p8 }
  0x51   :  { %p3275_p11 = pnand %p3274_p10, %p3268_p7 }
  0x53   :  { %3278 = shalt.err (!%p3275_p11)
}
  0x54   :  { %s3318_s2 = smov 64   ;;  %s3319_s12 = smov 4  }
  0x55   :  { %80 = dma.hbm_to_vmem [thread:$0]  %s3981_s6, 2048, %s75_s14, [#allocation9], %s3318_s2, %s3318_s2, %s3319_s12  }
  0x56   :  { %3301 = dma.done.wait [#allocation3], 4096  }
  0x57   :  { %3302 = vsyncadd [#allocation3], 4294963200 }
  0x58   :  { %3303 = dma.done.wait [#allocation6], 12288  }
  0x59   :  { %3304 = vsyncadd [#allocation6], 4294955008 }
  0x5a   :  { %3305 = dma.done.wait [#allocation9], 10240  }
  0x5b   :  { %3306 = vsyncadd [#allocation9], 4294957056  ;;  %v2897_v0 = vld [vmem:[#allocation7 + $0x4] ss:$16 sps:$4 sm:$0xff]   ;;  %v2899_v1 = vld [vmem:[#allocation7] ss:$16 sps:$4 sm:$0xff]  }
  0x5c   :  { %601 = vmatprep.subr.bf16.mxu0 %v2897_v0  ;;  %v2900_v2 = vld [vmem:[#allocation7 + $0x24] ss:$16 sps:$4 sm:$0xff]   ;;  %2725 = vmatprep.subr.bf16.mxu1 %v2897_v0  ;;  %v2902_v3 = vld [vmem:[#allocation7 + $0x20] ss:$16 sps:$4 sm:$0xff]   ;;  %v132_v14 = vld [vmem:[#allocation5 + $0x8] sm:$0xff] }
  0x5d   :  { %602 = vmatpush1.bf16.msra.mxu0 %v2899_v1  ;;  %2741 = vmatpush1.bf16.msra.mxu1 %v2899_v1  ;;  %v2903_v4 = vld [vmem:[#allocation7 + $0x44] ss:$16 sps:$4 sm:$0xff]   ;;  %v2905_v5 = vld [vmem:[#allocation7 + $0x40] ss:$16 sps:$4 sm:$0xff]   ;;  %v148_v23 = vld [vmem:[#allocation5 + $0x88] sm:$0xff] }
  0x5e   :  { %603 = vmatprep.subr.bf16.mxu0 %v2900_v2  ;;  %2726 = vmatprep.subr.bf16.mxu1 %v2900_v2  ;;  %v2906_v6 = vld [vmem:[#allocation7 + $0x64] ss:$16 sps:$4 sm:$0xff]   ;;  %v2908_v7 = vld [vmem:[#allocation7 + $0x60] ss:$16 sps:$4 sm:$0xff]   ;;  %v100_v39 = vld [vmem:[#allocation2 + $0x8] sm:$0xff] }
  0x5f   :  { %v2909_v8 = vld [vmem:[#allocation7 + $0x84] ss:$16 sps:$4 sm:$0xff]   ;;  %v2911_v9 = vld [vmem:[#allocation7 + $0x80] ss:$16 sps:$4 sm:$0xff]   ;;  %v116_v42 = vld [vmem:[#allocation2 + $0x88] sm:$0xff] }
  0x60   :  { %v2912_v10 = vld [vmem:[#allocation7 + $0xa4] ss:$16 sps:$4 sm:$0xff]   ;;  %v2914_v11 = vld [vmem:[#allocation7 + $0xa0] ss:$16 sps:$4 sm:$0xff]   ;;  %v134_v43 = vld [vmem:[#allocation5 + $0x18] sm:$0xff] }
  0x61   :  { %604 = vmatpush1.bf16.msra.mxu0 %v2902_v3  ;;  %2742 = vmatpush1.bf16.msra.mxu1 %v2902_v3  ;;  %v2915_v12 = vld [vmem:[#allocation7 + $0xc4] ss:$16 sps:$4 sm:$0xff]   ;;  %v2917_v16 = vld [vmem:[#allocation7 + $0xc0] ss:$16 sps:$4 sm:$0xff]   ;;  %v2947_v44 = vld [vmem:[#allocation7 + $0xc] ss:$16 sps:$4 sm:$0xff]  }
  0x62   :  { %605 = vmatprep.subr.bf16.mxu0 %v2903_v4  ;;  %2727 = vmatprep.subr.bf16.mxu1 %v2903_v4  ;;  %v131_v13 = vld [vmem:[#allocation5] sm:$0xff]  ;;  %v133_v40 = vld [vmem:[#allocation5 + $0x10] sm:$0xff]  ;;  %v150_v46 = vld [vmem:[#allocation5 + $0x98] sm:$0xff] }
  0x63   :  { %v3449_v15 = vpack.c.bf16 %v132_v14, %v131_v13  ;;  %v2918_v17 = vld [vmem:[#allocation7 + $0xe4] ss:$16 sps:$4 sm:$0xff]   ;;  %v2920_v18 = vld [vmem:[#allocation7 + $0xe0] ss:$16 sps:$4 sm:$0xff]   ;;  %v3459_v49 = vpack.c.bf16 %v134_v43, %v133_v40  ;;  %v2945_v50 = vld [vmem:[#allocation7 + $0x8] ss:$16 sps:$4 sm:$0xff]  }
  0x64   :  { %v2921_v19 = vld [vmem:[#allocation7 + $0x104] ss:$16 sps:$4 sm:$0xff]   ;;  %v2923_v20 = vld [vmem:[#allocation7 + $0x100] ss:$16 sps:$4 sm:$0xff]   ;;  %v2950_v51 = vld [vmem:[#allocation7 + $0x2c] ss:$16 sps:$4 sm:$0xff]  }
  0x65   :  { %606 = vmatpush1.bf16.msra.mxu0 %v2905_v5  ;;  %2743 = vmatpush1.bf16.msra.mxu1 %v2905_v5  ;;  %v2924_v21 = vld [vmem:[#allocation7 + $0x124] ss:$16 sps:$4 sm:$0xff]   ;;  %v2926_v25 = vld [vmem:[#allocation7 + $0x120] ss:$16 sps:$4 sm:$0xff]   ;;  %v102_v54 = vld [vmem:[#allocation2 + $0x18] sm:$0xff] }
  0x66   :  { %607 = vmatprep.subr.bf16.mxu0 %v2906_v6  ;;  %2728 = vmatprep.subr.bf16.mxu1 %v2906_v6  ;;  %v147_v22 = vld [vmem:[#allocation5 + $0x80] sm:$0xff]  ;;  %v149_v45 = vld [vmem:[#allocation5 + $0x90] sm:$0xff]  ;;  %v2948_v55 = vld [vmem:[#allocation7 + $0x28] ss:$16 sps:$4 sm:$0xff]  }
  0x67   :  { %633 = vmatprep.mubr.bf16.mxu0 %v3449_v15  ;;  %v3452_v24 = vpack.c.bf16 %v148_v23, %v147_v22  ;;  %v2927_v26 = vld [vmem:[#allocation7 + $0x144] ss:$16 sps:$4 sm:$0xff]   ;;  %v2929_v27 = vld [vmem:[#allocation7 + $0x140] ss:$16 sps:$4 sm:$0xff]   ;;  %v3461_v52 = vpack.c.bf16 %v150_v46, %v149_v45  ;;  %v136_v59 = vld [vmem:[#allocation5 + $0x28] sm:$0xff] }
  0x68   :  { %v2930_v28 = vld [vmem:[#allocation7 + $0x164] ss:$16 sps:$4 sm:$0xff]   ;;  %v2932_v29 = vld [vmem:[#allocation7 + $0x160] ss:$16 sps:$4 sm:$0xff]   ;;  %v118_v60 = vld [vmem:[#allocation2 + $0x98] sm:$0xff] }
  0x69   :  { %608 = vmatpush1.bf16.msra.mxu0 %v2908_v7  ;;  %2744 = vmatpush1.bf16.msra.mxu1 %v2908_v7  ;;  %v2933_v30 = vld [vmem:[#allocation7 + $0x184] ss:$16 sps:$4 sm:$0xff]   ;;  %v2935_v31 = vld [vmem:[#allocation7 + $0x180] ss:$16 sps:$4 sm:$0xff]   ;;  %v2953_v62 = vld [vmem:[#allocation7 + $0x4c] ss:$16 sps:$4 sm:$0xff]  }
  0x6a   :  { %609 = vmatprep.subr.bf16.mxu0 %v2909_v8  ;;  %2729 = vmatprep.subr.bf16.mxu1 %v2909_v8  ;;  %v2936_v32 = vld [vmem:[#allocation7 + $0x1a4] ss:$16 sps:$4 sm:$0xff]   ;;  %v2938_v33 = vld [vmem:[#allocation7 + $0x1a0] ss:$16 sps:$4 sm:$0xff]   ;;  %v152_v1 = vld [vmem:[#allocation5 + $0xa8] sm:$0xff] }
  0x6b   :  { %713 = vmatprep.mubr.bf16.mxu1 %v3452_v24  ;;  %v2939_v34 = vld [vmem:[#allocation7 + $0x1c4] ss:$16 sps:$4 sm:$0xff]   ;;  %v2941_v35 = vld [vmem:[#allocation7 + $0x1c0] ss:$16 sps:$4 sm:$0xff]   ;;  %v2951_v5 = vld [vmem:[#allocation7 + $0x48] ss:$16 sps:$4 sm:$0xff]  }
  0x6c   :  { %v2942_v36 = vld [vmem:[#allocation7 + $0x1e4] ss:$16 sps:$4 sm:$0xff]   ;;  %v2944_v37 = vld [vmem:[#allocation7 + $0x1e0] ss:$16 sps:$4 sm:$0xff]   ;;  %v2956_v6 = vld [vmem:[#allocation7 + $0x6c] ss:$16 sps:$4 sm:$0xff]  }
  0x6d   :  { %610 = vmatpush1.bf16.msra.mxu0 %v2911_v9  ;;  %2745 = vmatpush1.bf16.msra.mxu1 %v2911_v9  ;;  %v99_v38 = vld [vmem:[#allocation2] sm:$0xff]  ;;  %v101_v53 = vld [vmem:[#allocation2 + $0x10] sm:$0xff]  ;;  %v104_v9 = vld [vmem:[#allocation2 + $0x28] sm:$0xff] }
  0x6e   :  { %611 = vmatprep.subr.bf16.mxu0 %v2912_v10  ;;  %2730 = vmatprep.subr.bf16.mxu1 %v2912_v10  ;;  %v115_v41 = vld [vmem:[#allocation2 + $0x80] sm:$0xff]  ;;  %v3455_v47 = vpack.c.bf16 %v100_v39, %v99_v38  ;;  %v117_v56 = vld [vmem:[#allocation2 + $0x90] sm:$0xff]  ;;  %v3467_v2 = vpack.c.bf16 %v102_v54, %v101_v53  ;;  %v2954_v10 = vld [vmem:[#allocation7 + $0x68] ss:$16 sps:$4 sm:$0xff]  }
  0x6f   :  { %v3457_v48 = vpack.c.bf16 %v116_v42, %v115_v41  ;;  %v2995_v57 = vld [vmem:[#allocation8 + $0x4] ss:$8 sps:$4 sm:$0xff]   ;;  %v2993_v61 = vld [vmem:[#allocation8] ss:$8 sps:$4 sm:$0xff]   ;;  %v2998_v63 = vld [vmem:[#allocation8 + $0x14] ss:$8 sps:$4 sm:$0xff]   ;;  %v3469_v3 = vpack.c.bf16 %v118_v60, %v117_v56 }
  0x70   :  { %v135_v58 = vld [vmem:[#allocation5 + $0x20] sm:$0xff]  ;;  %v137_v13 = vld [vmem:[#allocation5 + $0x30] sm:$0xff]  ;;  %v138_v14 = vld [vmem:[#allocation5 + $0x38] sm:$0xff] }
  0x71   :  { %612 = vmatpush1.bf16.msra.mxu0 %v2914_v11  ;;  %2746 = vmatpush1.bf16.msra.mxu1 %v2914_v11  ;;  %v151_v0 = vld [vmem:[#allocation5 + $0xa0] sm:$0xff]  ;;  %v3471_v4 = vpack.c.bf16 %v136_v59, %v135_v58  ;;  %v3002_v38 = vld [vmem:[#allocation8 + $0x30] ss:$8 sps:$4 sm:$0xff]   ;;  %v156_v40 = vld [vmem:[#allocation5 + $0xc8] sm:$0xff] }
  0x72   :  { %613 = vmatprep.subr.bf16.mxu0 %v2915_v12  ;;  %2731 = vmatprep.subr.bf16.mxu1 %v2915_v12  ;;  %v3473_v7 = vpack.c.bf16 %v152_v1, %v151_v0  ;;  %v103_v8 = vld [vmem:[#allocation2 + $0x20] sm:$0xff]  ;;  %v2996_v12 = vld [vmem:[#allocation8 + $0x10] ss:$8 sps:$4 sm:$0xff]   ;;  %v2968_v45 = vld [vmem:[#allocation7 + $0xec] ss:$16 sps:$4 sm:$0xff]  }
  0x73   :  { %v119_v11 = vld [vmem:[#allocation2 + $0xa0] sm:$0xff]  ;;  %v3479_v22 = vpack.c.bf16 %v104_v9, %v103_v8  ;;  %v2963_v42 = vld [vmem:[#allocation7 + $0xc8] ss:$16 sps:$4 sm:$0xff]   ;;  %v3010_v53 = vld [vmem:[#allocation8 + $0x54] ss:$8 sps:$4 sm:$0xff]  }
  0x74   :  { %v155_v39 = vld [vmem:[#allocation5 + $0xc0] sm:$0xff]  ;;  %v2966_v56 = vld [vmem:[#allocation7 + $0xe8] ss:$16 sps:$4 sm:$0xff]   ;;  %v141_v59 = vld [vmem:[#allocation5 + $0x50] sm:$0xff] }
  0x75   :  { %614 = vmatpush1.bf16.msra.mxu0 %v2917_v16  ;;  %2747 = vmatpush1.bf16.msra.mxu1 %v2917_v16  ;;  %v120_v16 = vld [vmem:[#allocation2 + $0xa8] sm:$0xff]  ;;  %v107_v54 = vld [vmem:[#allocation2 + $0x40] sm:$0xff]  ;;  %v142_v60 = vld [vmem:[#allocation5 + $0x58] sm:$0xff] }
  0x76   :  { %615 = vmatprep.subr.bf16.mxu0 %v2918_v17  ;;  %2732 = vmatprep.subr.bf16.mxu1 %v2918_v17  ;;  %v3001_v17 = vld [vmem:[#allocation8 + $0x24] ss:$8 sps:$4 sm:$0xff]   ;;  %v3481_v23 = vpack.c.bf16 %v120_v16, %v119_v11  ;;  %v3008_v0 = vld [vmem:[#allocation8 + $0x50] ss:$8 sps:$4 sm:$0xff]   ;;  %v3507_v9 = vpack.c.bf16 %v142_v60, %v141_v59 }
  0x77   :  { %v3007_v41 = vld [vmem:[#allocation8 + $0x44] ss:$8 sps:$4 sm:$0xff]   ;;  %v2969_v1 = vld [vmem:[#allocation7 + $0x108] ss:$16 sps:$4 sm:$0xff]  }
  0x78   :  { %v124_v58 = vld [vmem:[#allocation2 + $0xc8] sm:$0xff] }
  0x79   :  { %616 = vmatpush1.bf16.msra.mxu0 %v2920_v18  ;;  %2748 = vmatpush1.bf16.msra.mxu1 %v2920_v18  ;;  %v2959_v18 = vld [vmem:[#allocation7 + $0x8c] ss:$16 sps:$4 sm:$0xff]   ;;  %v2972_v16 = vld [vmem:[#allocation7 + $0x128] ss:$16 sps:$4 sm:$0xff]  }
  0x7a   :  { %617 = vmatprep.subr.bf16.mxu0 %v2921_v19  ;;  %2733 = vmatprep.subr.bf16.mxu1 %v2921_v19  ;;  %v153_v19 = vld [vmem:[#allocation5 + $0xb0] sm:$0xff]  ;;  %v2974_v8 = vld [vmem:[#allocation7 + $0x12c] ss:$16 sps:$4 sm:$0xff]   ;;  %v2981_v60 = vld [vmem:[#allocation7 + $0x188] ss:$16 sps:$4 sm:$0xff]  }
  0x7d   :  { %618 = vmatpush1.bf16.msra.mxu0 %v2923_v20  ;;  %2749 = vmatpush1.bf16.msra.mxu1 %v2923_v20  ;;  %v154_v20 = vld [vmem:[#allocation5 + $0xb8] sm:$0xff] }
  0x7e   :  { %619 = vmatprep.subr.bf16.mxu0 %v2924_v21  ;;  %2734 = vmatprep.subr.bf16.mxu1 %v2924_v21  ;;  %v2999_v21 = vld [vmem:[#allocation8 + $0x20] ss:$8 sps:$4 sm:$0xff]  }
  0x81   :  { %620 = vmatpush1.bf16.msra.mxu0 %v2926_v25  ;;  %2750 = vmatpush1.bf16.msra.mxu1 %v2926_v25  ;;  %v2957_v25 = vld [vmem:[#allocation7 + $0x88] ss:$16 sps:$4 sm:$0xff]  }
  0x82   :  { %621 = vmatprep.subr.bf16.mxu0 %v2927_v26  ;;  %2735 = vmatprep.subr.bf16.mxu1 %v2927_v26  ;;  %v3483_v26 = vpack.c.bf16 %v138_v14, %v137_v13  ;;  %v109_v13 = vld [vmem:[#allocation2 + $0x50] sm:$0xff]  ;;  %v110_v14 = vld [vmem:[#allocation2 + $0x58] sm:$0xff] }
  0x85   :  { %622 = vmatpush1.bf16.msra.mxu0 %v2929_v27  ;;  %2751 = vmatpush1.bf16.msra.mxu1 %v2929_v27  ;;  %v2962_v27 = vld [vmem:[#allocation7 + $0xac] ss:$16 sps:$4 sm:$0xff]  }
  0x86   :  { %623 = vmatprep.subr.bf16.mxu0 %v2930_v28  ;;  %2736 = vmatprep.subr.bf16.mxu1 %v2930_v28  ;;  %v3004_v28 = vld [vmem:[#allocation8 + $0x34] ss:$8 sps:$4 sm:$0xff]  }
  0x89   :  { %624 = vmatpush1.bf16.msra.mxu0 %v2932_v29  ;;  %2752 = vmatpush1.bf16.msra.mxu1 %v2932_v29  ;;  %v3485_v29 = vpack.c.bf16 %v154_v20, %v153_v19  ;;  %v3016_v19 = vld [vmem:[#allocation8 + $0x74] ss:$8 sps:$4 sm:$0xff]   ;;  %v143_v20 = vld [vmem:[#allocation5 + $0x60] sm:$0xff] }
  0x8a   :  { %625 = vmatprep.subr.bf16.mxu0 %v2933_v30  ;;  %2737 = vmatprep.subr.bf16.mxu1 %v2933_v30  ;;  %v105_v30 = vld [vmem:[#allocation2 + $0x30] sm:$0xff] }
  0x8d   :  { %626 = vmatpush1.bf16.msra.mxu0 %v2935_v31  ;;  %2753 = vmatpush1.bf16.msra.mxu1 %v2935_v31  ;;  %v106_v31 = vld [vmem:[#allocation2 + $0x38] sm:$0xff] }
  0x8e   :  { %627 = vmatprep.subr.bf16.mxu0 %v2936_v32  ;;  %2738 = vmatprep.subr.bf16.mxu1 %v2936_v32  ;;  %v2960_v32 = vld [vmem:[#allocation7 + $0xa8] ss:$16 sps:$4 sm:$0xff]   ;;  %v3491_v43 = vpack.c.bf16 %v106_v31, %v105_v30  ;;  %v3515_v31 = vpack.c.bf16 %v110_v14, %v109_v13  ;;  %v3025_v14 = vld [vmem:[#allocation8 + $0xa4] ss:$8 sps:$4 sm:$0xff]  }
  0x8f   :  { %v2975_v30 = vld [vmem:[#allocation7 + $0x148] ss:$16 sps:$4 sm:$0xff]  }
  0x90   :  { %v130_v13 = vld [vmem:[#allocation2 + $0xf8] sm:$0xff] }
  0x91   :  { %628 = vmatpush1.bf16.msra.mxu0 %v2938_v33  ;;  %2754 = vmatpush1.bf16.msra.mxu1 %v2938_v33  ;;  %v121_v33 = vld [vmem:[#allocation2 + $0xb0] sm:$0xff] }
  0x92   :  { %629 = vmatprep.subr.bf16.mxu0 %v2939_v34  ;;  %2739 = vmatprep.subr.bf16.mxu1 %v2939_v34  ;;  %v139_v34 = vld [vmem:[#allocation5 + $0x40] sm:$0xff] }
  0x95   :  { %630 = vmatpush1.bf16.msra.mxu0 %v2941_v35  ;;  %2755 = vmatpush1.bf16.msra.mxu1 %v2941_v35  ;;  %v140_v35 = vld [vmem:[#allocation5 + $0x48] sm:$0xff] }
  0x96   :  { %631 = vmatprep.subr.bf16.mxu0 %v2942_v36  ;;  %2740 = vmatprep.subr.bf16.mxu1 %v2942_v36  ;;  %v122_v36 = vld [vmem:[#allocation2 + $0xb8] sm:$0xff]  ;;  %v3495_v46 = vpack.c.bf16 %v140_v35, %v139_v34 }
  0x99   :  { %632 = vmatpush1.bf16.msra.mxu0 %v2944_v37  ;;  %2756 = vmatpush1.bf16.msra.mxu1 %v2944_v37  ;;  %v2965_v37 = vld [vmem:[#allocation7 + $0xcc] ss:$16 sps:$4 sm:$0xff]  }
  0x9a   :  { %794 = vmatprep.subr.bf16.mxu1 %v2947_v44  ;;  %1575 = vmatprep.subr.bf16.mxu0 %v2995_v57  ;;  %v3493_v44 = vpack.c.bf16 %v122_v36, %v121_v33  ;;  %v123_v57 = vld [vmem:[#allocation2 + $0xc0] sm:$0xff]  ;;  %v2980_v33 = vld [vmem:[#allocation7 + $0x16c] ss:$16 sps:$4 sm:$0xff]   ;;  %v3014_v36 = vld [vmem:[#allocation8 + $0x70] ss:$8 sps:$4 sm:$0xff]  }
  0x9c   :  { %634 = vmatmul.mubr.bf16.vlgmr.msra.gmra.mrb[0].mxu0 %v3455_v47  ;;  %714 = vmatmul.mubr.bf16.vlgmr.msra.gmra.mrb[0].mxu1 %v3457_v48 }
  0x9d   :  { %643 = vmatprep.mubr.bf16.mxu0 %v3459_v49  ;;  %795 = vmatpush1.bf16.msra.mxu1 %v2945_v50  ;;  %v3005_v50 = vld [vmem:[#allocation8 + $0x40] ss:$8 sps:$4 sm:$0xff]  }
  0x9e   :  { %796 = vmatprep.subr.bf16.mxu1 %v2950_v51  ;;  %723 = vmatprep.mubr.bf16.mxu1 %v3461_v52  ;;  %v3497_v51 = vpack.c.bf16 %v156_v40, %v155_v39  ;;  %v3019_v39 = vld [vmem:[#allocation8 + $0x84] ss:$8 sps:$4 sm:$0xff]   ;;  %v2978_v40 = vld [vmem:[#allocation7 + $0x168] ss:$16 sps:$4 sm:$0xff]  }
  0x9f   :  { %1576 = vmatpush1.bf16.msra.mxu0 %v2993_v61  ;;  %v2971_v61 = vld [vmem:[#allocation7 + $0x10c] ss:$16 sps:$4 sm:$0xff]  }
  0xa0   :  { %1577 = vmatprep.subr.bf16.mxu0 %v2998_v63  ;;  %v158_v63 = vld [vmem:[#allocation5 + $0xd8] sm:$0xff] }
  0xa1   :  { %797 = vmatpush1.bf16.msra.mxu1 %v2948_v55  ;;  %v108_v55 = vld [vmem:[#allocation2 + $0x48] sm:$0xff] }
  0xa2   :  { %798 = vmatprep.subr.bf16.mxu1 %v2953_v62  ;;  %v157_v62 = vld [vmem:[#allocation5 + $0xd0] sm:$0xff] }
  0xa3   :  { %1578 = vmatpush1.bf16.msra.mxu0 %v2996_v12  ;;  %v3509_v11 = vpack.c.bf16 %v158_v63, %v157_v62  ;;  %v3011_v12 = vld [vmem:[#allocation8 + $0x60] ss:$8 sps:$4 sm:$0xff]   ;;  %v113_v63 = vld [vmem:[#allocation2 + $0x70] sm:$0xff] }
  0xa4   :  { %644 = vmatmul.mubr.bf16.gmra.mrb[4].mxu0 %v3467_v2  ;;  %724 = vmatmul.mubr.bf16.gmra.mrb[4].mxu1 %v3469_v3 }
  0xa5   :  { %653 = vmatprep.mubr.bf16.mxu0 %v3471_v4  ;;  %799 = vmatpush1.bf16.msra.mxu1 %v2951_v5  ;;  %v3503_v5 = vpack.c.bf16 %v108_v55, %v107_v54  ;;  %v161_v54 = vld [vmem:[#allocation5 + $0xf0] sm:$0xff]  ;;  %v162_v55 = vld [vmem:[#allocation5 + $0xf8] sm:$0xff] }
  0xa6   :  { %800 = vmatprep.subr.bf16.mxu1 %v2956_v6  ;;  %733 = vmatprep.mubr.bf16.mxu1 %v3473_v7  ;;  %v3505_v6 = vpack.c.bf16 %v124_v58, %v123_v57  ;;  %v3533_v62 = vpack.c.bf16 %v162_v55, %v161_v54 }
  0xa7   :  { %1579 = vmatprep.subr.bf16.mxu0 %v3001_v17  ;;  %v125_v17 = vld [vmem:[#allocation2 + $0xd0] sm:$0xff] }
  0xa8   :  { %1580 = vmatpush1.bf16.msra.mxu0 %v2999_v21  ;;  %v144_v21 = vld [vmem:[#allocation5 + $0x68] sm:$0xff] }
  0xa9   :  { %801 = vmatpush1.bf16.msra.mxu1 %v2954_v10  ;;  %1581 = vmatprep.subr.bf16.mxu0 %v3004_v28  ;;  %v3013_v10 = vld [vmem:[#allocation8 + $0x64] ss:$8 sps:$4 sm:$0xff]   ;;  %v3519_v34 = vpack.c.bf16 %v144_v21, %v143_v20  ;;  %v3023_v21 = vld [vmem:[#allocation8 + $0xa0] ss:$8 sps:$4 sm:$0xff]  }
  0xaa   :  { %802 = vmatprep.subr.bf16.mxu1 %v2959_v18  ;;  %v126_v18 = vld [vmem:[#allocation2 + $0xd8] sm:$0xff]  ;;  %v160_v28 = vld [vmem:[#allocation5 + $0xe8] sm:$0xff] }
  0xab   :  { %v2992_v20 = vld [vmem:[#allocation7 + $0x1ec] ss:$16 sps:$4 sm:$0xff]  }
  0xac   :  { %654 = vmatmul.mubr.bf16.gmra.mrb[8].mxu0 %v3479_v22  ;;  %734 = vmatmul.mubr.bf16.gmra.mrb[8].mxu1 %v3481_v23 }
  0xad   :  { %663 = vmatprep.mubr.bf16.mxu0 %v3483_v26  ;;  %803 = vmatpush1.bf16.msra.mxu1 %v2957_v25  ;;  %v2977_v25 = vld [vmem:[#allocation7 + $0x14c] ss:$16 sps:$4 sm:$0xff]  }
  0xae   :  { %804 = vmatprep.subr.bf16.mxu1 %v2962_v27  ;;  %743 = vmatprep.mubr.bf16.mxu1 %v3485_v29  ;;  %v159_v27 = vld [vmem:[#allocation5 + $0xe0] sm:$0xff] }
  0xaf   :  { %1582 = vmatpush1.bf16.msra.mxu0 %v3002_v38  ;;  %v3521_v35 = vpack.c.bf16 %v160_v28, %v159_v27  ;;  %v112_v38 = vld [vmem:[#allocation2 + $0x68] sm:$0xff]  ;;  %v3026_v28 = vld [vmem:[#allocation8 + $0xb0] ss:$8 sps:$4 sm:$0xff]  }
  0xb0   :  { %1583 = vmatprep.subr.bf16.mxu0 %v3007_v41  ;;  %v127_v41 = vld [vmem:[#allocation2 + $0xe0] sm:$0xff]  ;;  %v2990_v27 = vld [vmem:[#allocation7 + $0x1e8] ss:$16 sps:$4 sm:$0xff]  }
  0xb1   :  { %805 = vmatpush1.bf16.msra.mxu1 %v2960_v32  ;;  %v3517_v32 = vpack.c.bf16 %v126_v18, %v125_v17 }
  0xb2   :  { %806 = vmatprep.subr.bf16.mxu1 %v2965_v37  ;;  %v111_v37 = vld [vmem:[#allocation2 + $0x60] sm:$0xff] }
  0xb3   :  { %1584 = vmatpush1.bf16.msra.mxu0 %v3005_v50  ;;  %v146_v50 = vld [vmem:[#allocation5 + $0x78] sm:$0xff]  ;;  %v3527_v57 = vpack.c.bf16 %v112_v38, %v111_v37  ;;  %v3035_v38 = vld [vmem:[#allocation8 + $0xe0] ss:$8 sps:$4 sm:$0xff]  }
  0xb4   :  { %664 = vmatmul.mubr.bf16.gmra.mrb[12].mxu0 %v3491_v43  ;;  %744 = vmatmul.mubr.bf16.gmra.mrb[12].mxu1 %v3493_v44  ;;  %v3032_v37 = vld [vmem:[#allocation8 + $0xd0] ss:$8 sps:$4 sm:$0xff]  }
  0xb5   :  { %673 = vmatprep.mubr.bf16.mxu0 %v3495_v46  ;;  %807 = vmatpush1.bf16.msra.mxu1 %v2963_v42  ;;  %v128_v42 = vld [vmem:[#allocation2 + $0xe8] sm:$0xff] }
  0xb6   :  { %808 = vmatprep.subr.bf16.mxu1 %v2968_v45  ;;  %753 = vmatprep.mubr.bf16.mxu1 %v3497_v51  ;;  %v145_v45 = vld [vmem:[#allocation5 + $0x70] sm:$0xff]  ;;  %v3529_v58 = vpack.c.bf16 %v128_v42, %v127_v41 }
  0xb7   :  { %1585 = vmatprep.subr.bf16.mxu0 %v3010_v53  ;;  %v2983_v53 = vld [vmem:[#allocation7 + $0x18c] ss:$16 sps:$4 sm:$0xff]   ;;  %v3531_v59 = vpack.c.bf16 %v146_v50, %v145_v45 }
  0xb8   :  { %1586 = vmatpush1.bf16.msra.mxu0 %v3008_v0  ;;  %v3022_v0 = vld [vmem:[#allocation8 + $0x94] ss:$8 sps:$4 sm:$0xff]  }
  0xb9   :  { %809 = vmatpush1.bf16.msra.mxu1 %v2966_v56  ;;  %1587 = vmatprep.subr.bf16.mxu0 %v3013_v10  ;;  %v3017_v56 = vld [vmem:[#allocation8 + $0x80] ss:$8 sps:$4 sm:$0xff]   ;;  %v3020_v10 = vld [vmem:[#allocation8 + $0x90] ss:$8 sps:$4 sm:$0xff]  }
  0xba   :  { %810 = vmatprep.subr.bf16.mxu1 %v2971_v61  ;;  %v2986_v61 = vld [vmem:[#allocation7 + $0x1ac] ss:$16 sps:$4 sm:$0xff]  }
  0xbc   :  { %674 = vmatmul.mubr.bf16.gmra.mrb[16].mxu0 %v3503_v5  ;;  %754 = vmatmul.mubr.bf16.gmra.mrb[16].mxu1 %v3505_v6 }
  0xbd   :  { %683 = vmatprep.mubr.bf16.mxu0 %v3507_v9  ;;  %811 = vmatpush1.bf16.msra.mxu1 %v2969_v1  ;;  %v114_v1 = vld [vmem:[#allocation2 + $0x78] sm:$0xff] }
  0xbe   :  { %812 = vmatprep.subr.bf16.mxu1 %v2974_v8  ;;  %763 = vmatprep.mubr.bf16.mxu1 %v3509_v11  ;;  %v2984_v8 = vld [vmem:[#allocation7 + $0x1a8] ss:$16 sps:$4 sm:$0xff]   ;;  %v170_v17 = vpack.c.bf16 %v114_v1, %v113_v63  ;;  %v3046_v1 = vld [vmem:[#allocation8 + $0x114] ss:$8 sps:$4 sm:$0xff]  }
  0xbf   :  { %1588 = vmatpush1.bf16.msra.mxu0 %v3011_v12  ;;  %v129_v12 = vld [vmem:[#allocation2 + $0xf0] sm:$0xff] }
  0xc0   :  { %1589 = vmatprep.subr.bf16.mxu0 %v3016_v19  ;;  %v3539_v18 = vpack.c.bf16 %v130_v13, %v129_v12  ;;  %v2987_v19 = vld [vmem:[#allocation7 + $0x1c8] ss:$16 sps:$4 sm:$0xff]  }
  0xc1   :  { %813 = vmatpush1.bf16.msra.mxu1 %v2972_v16  ;;  %v2989_v16 = vld [vmem:[#allocation7 + $0x1cc] ss:$16 sps:$4 sm:$0xff]  }
  0xc2   :  { %814 = vmatprep.subr.bf16.mxu1 %v2977_v25  ;;  %v3028_v25 = vld [vmem:[#allocation8 + $0xb4] ss:$8 sps:$4 sm:$0xff]  }
  0xc3   :  { %1590 = vmatpush1.bf16.msra.mxu0 %v3014_v36  ;;  %v3034_v36 = vld [vmem:[#allocation8 + $0xd4] ss:$8 sps:$4 sm:$0xff]  }
  0xc4   :  { %684 = vmatmul.mubr.bf16.gmra.mrb[20].mxu0 %v3515_v31  ;;  %764 = vmatmul.mubr.bf16.gmra.mrb[20].mxu1 %v3517_v32 }
  0xc5   :  { %693 = vmatprep.mubr.bf16.mxu0 %v3519_v34  ;;  %815 = vmatpush1.bf16.msra.mxu1 %v2975_v30  ;;  %v3031_v30 = vld [vmem:[#allocation8 + $0xc4] ss:$8 sps:$4 sm:$0xff]  }
  0xc6   :  { %816 = vmatprep.subr.bf16.mxu1 %v2980_v33  ;;  %773 = vmatprep.mubr.bf16.mxu1 %v3521_v35  ;;  %v3029_v33 = vld [vmem:[#allocation8 + $0xc0] ss:$8 sps:$4 sm:$0xff]  }
  0xc7   :  { %1591 = vmatprep.subr.bf16.mxu0 %v3019_v39 }
  0xc8   :  { %1592 = vmatpush1.bf16.msra.mxu0 %v3017_v56 }
  0xc9   :  { %817 = vmatpush1.bf16.msra.mxu1 %v2978_v40  ;;  %1593 = vmatprep.subr.bf16.mxu0 %v3022_v0 }
  0xca   :  { %818 = vmatprep.subr.bf16.mxu1 %v2983_v53 }
  0xcc   :  { %694 = vmatmul.mubr.bf16.gmra.mrb[24].mxu0 %v3527_v57  ;;  %774 = vmatmul.mubr.bf16.gmra.mrb[24].mxu1 %v3529_v58 }
  0xcd   :  { %703 = vmatprep.mubr.bf16.mxu0 %v3531_v59  ;;  %819 = vmatpush1.bf16.msra.mxu1 %v2981_v60  ;;  %v3041_v60 = vld [vmem:[#allocation8 + $0x100] ss:$8 sps:$4 sm:$0xff]  }
  0xce   :  { %820 = vmatprep.subr.bf16.mxu1 %v2986_v61  ;;  %783 = vmatprep.mubr.bf16.mxu1 %v3533_v62 }
  0xcf   :  { %1594 = vmatpush1.bf16.msra.mxu0 %v3020_v10 }
  0xd0   :  { %1595 = vmatprep.subr.bf16.mxu0 %v3025_v14 }
  0xd1   :  { %821 = vmatpush1.bf16.msra.mxu1 %v2984_v8 }
  0xd2   :  { %822 = vmatprep.subr.bf16.mxu1 %v2989_v16 }
  0xd3   :  { %1596 = vmatpush1.bf16.msra.mxu0 %v3023_v21 }
  0xd4   :  { %704 = vmatmul.mubr.bf16.gmra.mrb[28].mxu0 %v170_v17  ;;  %784 = vmatmul.mubr.bf16.gmra.mrb[28].mxu1 %v3539_v18 }
  0xd5   :  { %823 = vmatpush1.bf16.msra.mxu1 %v2987_v19  ;;  %826 = vmatprep.mubr.bf16.mxu1 %v3449_v15  ;;  %v3037_v15 = vld [vmem:[#allocation8 + $0xe4] ss:$8 sps:$4 sm:$0xff]  }
  0xd6   :  { %824 = vmatprep.subr.bf16.mxu1 %v2992_v20  ;;  %1597 = vmatprep.subr.bf16.mxu0 %v3028_v25 }
  0xd7   :  { %1598 = vmatpush1.bf16.msra.mxu0 %v3026_v28 }
  0xd8   :  { %1599 = vmatprep.subr.bf16.mxu0 %v3031_v30 }
  0xd9   :  { %825 = vmatpush1.bf16.msra.mxu1 %v2990_v27  ;;  %v3044_v27 = vld [vmem:[#allocation8 + $0x110] ss:$8 sps:$4 sm:$0xff]  }
  0xdb   :  { %1600 = vmatpush1.bf16.msra.mxu0 %v3029_v33 }
  0xdc   :  { %827 = vmatmul.mubr.bf16.vlgmr.msra.gmra.mrb[32].mxu1 %v3455_v47  ;;  %1601 = vmatprep.subr.bf16.mxu0 %v3034_v36  ;;  %v3040_v47 = vld [vmem:[#allocation8 + $0xf4] ss:$8 sps:$4 sm:$0xff]  }
  0xdd   :  { %836 = vmatprep.mubr.bf16.mxu1 %v3459_v49  ;;  %v3038_v49 = vld [vmem:[#allocation8 + $0xf0] ss:$8 sps:$4 sm:$0xff]  }
  0xdf   :  { %1602 = vmatpush1.bf16.msra.mxu0 %v3032_v37  ;;  %v3049_v37 = vld [vmem:[#allocation8 + $0x124] ss:$8 sps:$4 sm:$0xff]  }
  0xe0   :  { %1603 = vmatprep.subr.bf16.mxu0 %v3037_v15 }
  0xe3   :  { %1604 = vmatpush1.bf16.msra.mxu0 %v3035_v38 }
  0xe4   :  { %837 = vmatmul.mubr.bf16.gmra.mrb[36].mxu1 %v3467_v2  ;;  %1605 = vmatprep.subr.bf16.mxu0 %v3040_v47  ;;  %v3043_v2 = vld [vmem:[#allocation8 + $0x104] ss:$8 sps:$4 sm:$0xff]  }
  0xe5   :  { %846 = vmatprep.mubr.bf16.mxu1 %v3471_v4 }
  0xe7   :  { %1606 = vmatpush1.bf16.msra.mxu0 %v3038_v49 }
  0xe8   :  { %1768 = vmatprep.subr.bf16.mxu0 %v3043_v2 }
  0xec   :  { %847 = vmatmul.mubr.bf16.gmra.mrb[40].mxu1 %v3479_v22 }
  0xed   :  { %856 = vmatprep.mubr.bf16.mxu1 %v3483_v26 }
  0xf4   :  { %857 = vmatmul.mubr.bf16.gmra.mrb[44].mxu1 %v3491_v43 }
  0xf5   :  { %866 = vmatprep.mubr.bf16.mxu1 %v3495_v46 }
  0xfc   :  { %867 = vmatmul.mubr.bf16.gmra.mrb[48].mxu1 %v3503_v5 }
  0xfd   :  { %876 = vmatprep.mubr.bf16.mxu1 %v3507_v9 }
 0x104   :  { %877 = vmatmul.mubr.bf16.gmra.mrb[52].mxu1 %v3515_v31 }
 0x105   :  { %886 = vmatprep.mubr.bf16.mxu1 %v3519_v34 }
 0x10c   :  { %887 = vmatmul.mubr.bf16.gmra.mrb[56].mxu1 %v3527_v57 }
 0x10d   :  { %896 = vmatprep.mubr.bf16.mxu1 %v3531_v59 }
 0x114   :  { %897 = vmatmul.mubr.bf16.gmra.mrb[60].mxu1 %v170_v17 }
 0x115   :  { %906 = vmatprep.mubr.bf16.mxu1 %v3452_v24  ;;  %v261_v24 = vlaneseq }
 0x11c   :  { %907 = vmatmul.mubr.bf16.gmra.mrb[64].mxu1 %v3457_v48  ;;  %v3573_v48 = vshrl.u32 %v261_v24, 7 }
 0x11d   :  { %916 = vmatprep.mubr.bf16.mxu1 %v3461_v52 }
 0x11e   :  { %v263_v52 = vsub.s32 0, %v3573_v48  ;;  %v267_v4 = vsub.s32 1, %v3573_v48 }
 0x124   :  { %917 = vmatmul.mubr.bf16.gmra.mrb[68].mxu1 %v3469_v3  ;;  %v3579_v3 = vld [vmem:[%s3978_s3] sm:$0xf] }
 0x125   :  { %926 = vmatprep.mubr.bf16.mxu1 %v3473_v7  ;;  %v3585_v7 = vrot.slane %v3579_v3, %v263_v52  ;;  %v3590_v22 = vrot.slane %v3579_v3, %v267_v4 }
 0x12c   :  { %927 = vmatmul.mubr.bf16.gmra.mrb[72].mxu1 %v3481_v23 }
 0x12d   :  { %936 = vmatprep.mubr.bf16.mxu1 %v3485_v29 }
 0x134   :  { %937 = vmatmul.mubr.bf16.gmra.mrb[76].mxu1 %v3493_v44 }
 0x135   :  { %946 = vmatprep.mubr.bf16.mxu1 %v3497_v51 }
 0x13c   :  { %947 = vmatmul.mubr.bf16.gmra.mrb[80].mxu1 %v3505_v6 }
 0x13d   :  { %956 = vmatprep.mubr.bf16.mxu1 %v3509_v11 }
 0x144   :  { %957 = vmatmul.mubr.bf16.gmra.mrb[84].mxu1 %v3517_v32 }
 0x145   :  { %966 = vmatprep.mubr.bf16.mxu1 %v3521_v35 }
 0x14c   :  { %967 = vmatmul.mubr.bf16.gmra.mrb[88].mxu1 %v3529_v58 }
 0x14d   :  { %976 = vmatprep.mubr.bf16.mxu1 %v3533_v62 }
 0x154   :  { %977 = vmatmul.mubr.bf16.gmra.mrb[92].mxu1 %v3539_v18 }
 0x16f   :  { %v635_v23 = vpop.f32.mrb[0].mxu0  ;;  %v715_v26 = vpop.f32.mrb[0].mxu1 }
 0x170   :  { %v636_v29 = vadd.f32 %v635_v23, %v3585_v7  ;;  %v637_v43 = vpop.f32.mrb[1].mxu0  ;;  %v716_v44 = vadd.f32 %v715_v26, %v3585_v7  ;;  %v717_v46 = vpop.f32.mrb[1].mxu1 }
 0x171   :  { %v638_v51 = vadd.f32 %v637_v43, %v3590_v22  ;;  %v639_v5 = vpop.f32.mrb[2].mxu0  ;;  %v718_v6 = vadd.f32 %v717_v46, %v3590_v22  ;;  %v719_v9 = vpop.f32.mrb[2].mxu1 }
 0x172   :  { %v640_v11 = vadd.f32 %v639_v5, %v3585_v7  ;;  %v641_v31 = vpop.f32.mrb[3].mxu0  ;;  %v1051_v32 = vmax.f32 %v716_v44, 0.0  ;;  %v720_v34 = vadd.f32 %v719_v9, %v3585_v7  ;;  %v721_v35 = vpop.f32.mrb[3].mxu1  ;;  %v987_v42 = vmax.f32 %v636_v29, 0.0  ;;  %v3047_v29 = vld [vmem:[#allocation8 + $0x120] ss:$8 sps:$4 sm:$0xff]  }
 0x173   :  { %v642_v39 = vadd.f32 %v641_v31, %v3590_v22  ;;  %v1052_v40 = vmax.f32 %v718_v6, 0.0  ;;  %v722_v41 = vadd.f32 %v721_v35, %v3590_v22  ;;  %v988_v53 = vmax.f32 %v638_v51, 0.0  ;;  %v3052_v5 = vld [vmem:[#allocation8 + $0x134] ss:$8 sps:$4 sm:$0xff]  }
 0x174   :  { %v991_v45 = vmax.f32 %v640_v11, 0.0  ;;  %v1055_v50 = vmax.f32 %v720_v34, 0.0 }
 0x175   :  { %v992_v54 = vmax.f32 %v642_v39, 0.0  ;;  %v1056_v55 = vmax.f32 %v722_v41, 0.0 }
 0x176   :  { %v1115_v56 = vpack.c.bf16 %v991_v45, %v987_v42  ;;  %v3600_v57 = vpack.c.bf16 %v1055_v50, %v1051_v32  ;;  %v3050_v50 = vld [vmem:[#allocation8 + $0x130] ss:$8 sps:$4 sm:$0xff]  }
 0x177   :  { %v1116_v58 = vpack.c.bf16 %v992_v54, %v988_v53  ;;  %v645_v59 = vpop.f32.mrb[4].mxu0  ;;  %v3602_v61 = vpack.c.bf16 %v1056_v55, %v1052_v40  ;;  %v725_v62 = vpop.f32.mrb[4].mxu1 }
 0x178   :  { %v646_v63 = vadd.f32 %v645_v59, %v3585_v7  ;;  %v647_v0 = vpop.f32.mrb[5].mxu0  ;;  %v726_v8 = vadd.f32 %v725_v62, %v3585_v7  ;;  %v727_v10 = vpop.f32.mrb[5].mxu1 }
 0x179   :  { %v648_v12 = vadd.f32 %v647_v0, %v3590_v22  ;;  %v649_v13 = vpop.f32.mrb[6].mxu0  ;;  %1607 = vmatprep.mubr.bf16.mxu0 %v1116_v58  ;;  %v728_v14 = vadd.f32 %v727_v10, %v3590_v22  ;;  %v729_v16 = vpop.f32.mrb[6].mxu1  ;;  %v3055_v58 = vld [vmem:[#allocation8 + $0x144] ss:$8 sps:$4 sm:$0xff]  }
 0x17a   :  { %v650_v17 = vadd.f32 %v649_v13, %v3585_v7  ;;  %v651_v18 = vpop.f32.mrb[7].mxu0  ;;  %1608 = vmatmul.mubr.bf16.vlgmr.msra.gmra.mrb[32].mxu0 %v1115_v56  ;;  %v1059_v19 = vmax.f32 %v726_v8, 0.0  ;;  %v730_v20 = vadd.f32 %v729_v16, %v3585_v7  ;;  %v731_v21 = vpop.f32.mrb[7].mxu1  ;;  %v995_v33 = vmax.f32 %v646_v63, 0.0 }
 0x17b   :  { %v652_v25 = vadd.f32 %v651_v18, %v3590_v22  ;;  %1769 = vmatpush1.bf16.msra.mxu0 %v3041_v60  ;;  %v1060_v28 = vmax.f32 %v728_v14, 0.0  ;;  %v732_v30 = vadd.f32 %v731_v21, %v3590_v22  ;;  %v996_v38 = vmax.f32 %v648_v12, 0.0  ;;  %v3053_v12 = vld [vmem:[#allocation8 + $0x140] ss:$8 sps:$4 sm:$0xff]   ;;  %v3058_v18 = vld [vmem:[#allocation8 + $0x154] ss:$8 sps:$4 sm:$0xff]  }
 0x17c   :  { %v999_v36 = vmax.f32 %v650_v17, 0.0  ;;  %1770 = vmatprep.subr.bf16.mxu0 %v3046_v1  ;;  %v1063_v15 = vmax.f32 %v730_v20, 0.0 }
 0x17d   :  { %v1000_v47 = vmax.f32 %v652_v25, 0.0  ;;  %v1064_v49 = vmax.f32 %v732_v30, 0.0 }
 0x17e   :  { %v1119_v2 = vpack.c.bf16 %v999_v36, %v995_v33  ;;  %v3612_v24 = vpack.c.bf16 %v1063_v15, %v1059_v19 }
 0x17f   :  { %v1120_v23 = vpack.c.bf16 %v1000_v47, %v996_v38  ;;  %v655_v26 = vpop.f32.mrb[8].mxu0  ;;  %1771 = vmatpush1.bf16.msra.mxu0 %v3044_v27  ;;  %v3614_v43 = vpack.c.bf16 %v1064_v49, %v1060_v28  ;;  %v735_v44 = vpop.f32.mrb[8].mxu1  ;;  %v3056_v47 = vld [vmem:[#allocation8 + $0x150] ss:$8 sps:$4 sm:$0xff]  }
 0x180   :  { %v656_v46 = vadd.f32 %v655_v26, %v3585_v7  ;;  %v657_v51 = vpop.f32.mrb[9].mxu0  ;;  %1772 = vmatprep.subr.bf16.mxu0 %v3049_v37  ;;  %v736_v6 = vadd.f32 %v735_v44, %v3585_v7  ;;  %v737_v9 = vpop.f32.mrb[9].mxu1 }
 0x181   :  { %v658_v11 = vadd.f32 %v657_v51, %v3590_v22  ;;  %v659_v31 = vpop.f32.mrb[10].mxu0  ;;  %1617 = vmatprep.mubr.bf16.mxu0 %v1120_v23  ;;  %v738_v32 = vadd.f32 %v737_v9, %v3590_v22  ;;  %v739_v34 = vpop.f32.mrb[10].mxu1 }
 0x182   :  { %v660_v35 = vadd.f32 %v659_v31, %v3585_v7  ;;  %v661_v39 = vpop.f32.mrb[11].mxu0  ;;  %1618 = vmatmul.mubr.bf16.gmra.mrb[36].mxu0 %v1119_v2  ;;  %v1067_v40 = vmax.f32 %v736_v6, 0.0  ;;  %v740_v41 = vadd.f32 %v739_v34, %v3585_v7  ;;  %v741_v42 = vpop.f32.mrb[11].mxu1  ;;  %v1003_v55 = vmax.f32 %v656_v46, 0.0 }
 0x183   :  { %v662_v45 = vadd.f32 %v661_v39, %v3590_v22  ;;  %1773 = vmatpush1.bf16.msra.mxu0 %v3047_v29  ;;  %v1068_v53 = vmax.f32 %v738_v32, 0.0  ;;  %v742_v54 = vadd.f32 %v741_v42, %v3590_v22  ;;  %v1004_v60 = vmax.f32 %v658_v11, 0.0  ;;  %v3061_v29 = vld [vmem:[#allocation8 + $0x164] ss:$8 sps:$4 sm:$0xff]   ;;  %v3059_v32 = vld [vmem:[#allocation8 + $0x160] ss:$8 sps:$4 sm:$0xff]  }
 0x184   :  { %v1007_v56 = vmax.f32 %v660_v35, 0.0  ;;  %1774 = vmatprep.subr.bf16.mxu0 %v3052_v5  ;;  %v1071_v59 = vmax.f32 %v740_v41, 0.0  ;;  %v3064_v41 = vld [vmem:[#allocation8 + $0x174] ss:$8 sps:$4 sm:$0xff]  }
 0x185   :  { %v1008_v62 = vmax.f32 %v662_v45, 0.0  ;;  %v1072_v63 = vmax.f32 %v742_v54, 0.0 }
 0x186   :  { %v1123_v0 = vpack.c.bf16 %v1007_v56, %v1003_v55  ;;  %v3624_v1 = vpack.c.bf16 %v1071_v59, %v1067_v40 }
 0x187   :  { %v1124_v8 = vpack.c.bf16 %v1008_v62, %v1004_v60  ;;  %v665_v10 = vpop.f32.mrb[12].mxu0  ;;  %1775 = vmatpush1.bf16.msra.mxu0 %v3050_v50  ;;  %v3626_v13 = vpack.c.bf16 %v1072_v63, %v1068_v53  ;;  %v745_v14 = vpop.f32.mrb[12].mxu1 }
 0x188   :  { %v666_v16 = vadd.f32 %v665_v10, %v3585_v7  ;;  %v667_v17 = vpop.f32.mrb[13].mxu0  ;;  %1776 = vmatprep.subr.bf16.mxu0 %v3055_v58  ;;  %v746_v19 = vadd.f32 %v745_v14, %v3585_v7  ;;  %v747_v20 = vpop.f32.mrb[13].mxu1 }
 0x189   :  { %v668_v21 = vadd.f32 %v667_v17, %v3590_v22  ;;  %v669_v25 = vpop.f32.mrb[14].mxu0  ;;  %1627 = vmatprep.mubr.bf16.mxu0 %v1124_v8  ;;  %v748_v27 = vadd.f32 %v747_v20, %v3590_v22  ;;  %v749_v28 = vpop.f32.mrb[14].mxu1 }
 0x18a   :  { %v670_v30 = vadd.f32 %v669_v25, %v3585_v7  ;;  %v671_v33 = vpop.f32.mrb[15].mxu0  ;;  %1628 = vmatmul.mubr.bf16.gmra.mrb[40].mxu0 %v1123_v0  ;;  %v1075_v36 = vmax.f32 %v746_v19, 0.0  ;;  %v750_v37 = vadd.f32 %v749_v28, %v3585_v7  ;;  %v751_v15 = vpop.f32.mrb[15].mxu1  ;;  %v1011_v23 = vmax.f32 %v666_v16, 0.0  ;;  %v3062_v0 = vld [vmem:[#allocation8 + $0x170] ss:$8 sps:$4 sm:$0xff]  }
 0x18b   :  { %v672_v38 = vadd.f32 %v671_v33, %v3590_v22  ;;  %1777 = vmatpush1.bf16.msra.mxu0 %v3053_v12  ;;  %v1076_v49 = vmax.f32 %v748_v27, 0.0  ;;  %v752_v2 = vadd.f32 %v751_v15, %v3590_v22  ;;  %v1012_v46 = vmax.f32 %v668_v21, 0.0  ;;  %v3067_v16 = vld [vmem:[#allocation8 + $0x184] ss:$8 sps:$4 sm:$0xff]  }
 0x18c   :  { %v1015_v26 = vmax.f32 %v670_v30, 0.0  ;;  %1778 = vmatprep.subr.bf16.mxu0 %v3058_v18  ;;  %v1079_v44 = vmax.f32 %v750_v37, 0.0  ;;  %v3065_v30 = vld [vmem:[#allocation8 + $0x180] ss:$8 sps:$4 sm:$0xff]  }
 0x18d   :  { %v1016_v51 = vmax.f32 %v672_v38, 0.0  ;;  %v1080_v5 = vmax.f32 %v752_v2, 0.0  ;;  %v3070_v38 = vld [vmem:[#allocation8 + $0x194] ss:$8 sps:$4 sm:$0xff]  }
 0x18e   :  { %v1127_v6 = vpack.c.bf16 %v1015_v26, %v1011_v23  ;;  %v3636_v9 = vpack.c.bf16 %v1079_v44, %v1075_v36 }
 0x18f   :  { %v1128_v11 = vpack.c.bf16 %v1016_v51, %v1012_v46  ;;  %v675_v31 = vpop.f32.mrb[16].mxu0  ;;  %1779 = vmatpush1.bf16.msra.mxu0 %v3056_v47  ;;  %v3638_v34 = vpack.c.bf16 %v1080_v5, %v1076_v49  ;;  %v755_v35 = vpop.f32.mrb[16].mxu1 }
 0x190   :  { %v676_v39 = vadd.f32 %v675_v31, %v3585_v7  ;;  %v677_v40 = vpop.f32.mrb[17].mxu0  ;;  %1780 = vmatprep.subr.bf16.mxu0 %v3061_v29  ;;  %v756_v42 = vadd.f32 %v755_v35, %v3585_v7  ;;  %v757_v45 = vpop.f32.mrb[17].mxu1  ;;  %v3068_v31 = vld [vmem:[#allocation8 + $0x190] ss:$8 sps:$4 sm:$0xff]  }
 0x191   :  { %v678_v50 = vadd.f32 %v677_v40, %v3590_v22  ;;  %v679_v53 = vpop.f32.mrb[18].mxu0  ;;  %1637 = vmatprep.mubr.bf16.mxu0 %v1128_v11  ;;  %v758_v54 = vadd.f32 %v757_v45, %v3590_v22  ;;  %v759_v55 = vpop.f32.mrb[18].mxu1 }
 0x192   :  { %v680_v56 = vadd.f32 %v679_v53, %v3585_v7  ;;  %v681_v58 = vpop.f32.mrb[19].mxu0  ;;  %1638 = vmatmul.mubr.bf16.gmra.mrb[44].mxu0 %v1127_v6  ;;  %v1083_v59 = vmax.f32 %v756_v42, 0.0  ;;  %v760_v60 = vadd.f32 %v759_v55, %v3585_v7  ;;  %v761_v62 = vpop.f32.mrb[19].mxu1  ;;  %v1019_v12 = vmax.f32 %v676_v39, 0.0 }
 0x193   :  { %v682_v63 = vadd.f32 %v681_v58, %v3590_v22  ;;  %1781 = vmatpush1.bf16.msra.mxu0 %v3059_v32  ;;  %v1084_v8 = vmax.f32 %v758_v54, 0.0  ;;  %v762_v10 = vadd.f32 %v761_v62, %v3590_v22  ;;  %v1020_v18 = vmax.f32 %v678_v50, 0.0 }
 0x194   :  { %v1023_v14 = vmax.f32 %v680_v56, 0.0  ;;  %1782 = vmatprep.subr.bf16.mxu0 %v3064_v41  ;;  %v1087_v17 = vmax.f32 %v760_v60, 0.0  ;;  %v3073_v41 = vld [vmem:[#allocation8 + $0x1a4] ss:$8 sps:$4 sm:$0xff]  }
 0x195   :  { %v1024_v19 = vmax.f32 %v682_v63, 0.0  ;;  %v1088_v20 = vmax.f32 %v762_v10, 0.0 }
 0x196   :  { %v1131_v21 = vpack.c.bf16 %v1023_v14, %v1019_v12  ;;  %v3648_v25 = vpack.c.bf16 %v1087_v17, %v1083_v59  ;;  %v3071_v59 = vld [vmem:[#allocation8 + $0x1a0] ss:$8 sps:$4 sm:$0xff]  }
 0x197   :  { %v1132_v27 = vpack.c.bf16 %v1024_v19, %v1020_v18  ;;  %v685_v28 = vpop.f32.mrb[20].mxu0  ;;  %1783 = vmatpush1.bf16.msra.mxu0 %v3062_v0  ;;  %v3650_v33 = vpack.c.bf16 %v1088_v20, %v1084_v8  ;;  %v765_v36 = vpop.f32.mrb[20].mxu1  ;;  %v3076_v8 = vld [vmem:[#allocation8 + $0x1b4] ss:$8 sps:$4 sm:$0xff]  }
 0x198   :  { %v686_v37 = vadd.f32 %v685_v28, %v3585_v7  ;;  %v687_v15 = vpop.f32.mrb[21].mxu0  ;;  %1784 = vmatprep.subr.bf16.mxu0 %v3067_v16  ;;  %v766_v47 = vadd.f32 %v765_v36, %v3585_v7  ;;  %v767_v49 = vpop.f32.mrb[21].mxu1  ;;  %v3074_v36 = vld [vmem:[#allocation8 + $0x1b0] ss:$8 sps:$4 sm:$0xff]  }
 0x199   :  { %v688_v2 = vadd.f32 %v687_v15, %v3590_v22  ;;  %v689_v23 = vpop.f32.mrb[22].mxu0  ;;  %1647 = vmatprep.mubr.bf16.mxu0 %v1132_v27  ;;  %v768_v26 = vadd.f32 %v767_v49, %v3590_v22  ;;  %v769_v29 = vpop.f32.mrb[22].mxu1  ;;  %v3079_v49 = vld [vmem:[#allocation8 + $0x1c4] ss:$8 sps:$4 sm:$0xff]  }
 0x19a   :  { %v690_v44 = vadd.f32 %v689_v23, %v3585_v7  ;;  %v691_v46 = vpop.f32.mrb[23].mxu0  ;;  %1648 = vmatmul.mubr.bf16.gmra.mrb[48].mxu0 %v1131_v21  ;;  %v1091_v51 = vmax.f32 %v766_v47, 0.0  ;;  %v770_v5 = vadd.f32 %v769_v29, %v3585_v7  ;;  %v771_v6 = vpop.f32.mrb[23].mxu1  ;;  %v1027_v39 = vmax.f32 %v686_v37, 0.0 }
 0x19b   :  { %v692_v11 = vadd.f32 %v691_v46, %v3590_v22  ;;  %1785 = vmatpush1.bf16.msra.mxu0 %v3065_v30  ;;  %v1092_v32 = vmax.f32 %v768_v26, 0.0  ;;  %v772_v35 = vadd.f32 %v771_v6, %v3590_v22  ;;  %v1028_v45 = vmax.f32 %v688_v2, 0.0  ;;  %v3077_v6 = vld [vmem:[#allocation8 + $0x1c0] ss:$8 sps:$4 sm:$0xff]  }
 0x19c   :  { %v1031_v40 = vmax.f32 %v690_v44, 0.0  ;;  %1786 = vmatprep.subr.bf16.mxu0 %v3070_v38  ;;  %v1095_v42 = vmax.f32 %v770_v5, 0.0 }
 0x19d   :  { %v1032_v50 = vmax.f32 %v692_v11, 0.0  ;;  %v1096_v53 = vmax.f32 %v772_v35, 0.0 }
 0x19e   :  { %v1135_v54 = vpack.c.bf16 %v1031_v40, %v1027_v39  ;;  %v3660_v55 = vpack.c.bf16 %v1095_v42, %v1091_v51  ;;  %v3082_v39 = vld [vmem:[#allocation8 + $0x1d4] ss:$8 sps:$4 sm:$0xff]   ;;  %v271_v42 = vsub.s32 2, %v3573_v48 }
 0x19f   :  { %v1136_v56 = vpack.c.bf16 %v1032_v50, %v1028_v45  ;;  %v695_v58 = vpop.f32.mrb[24].mxu0  ;;  %1787 = vmatpush1.bf16.msra.mxu0 %v3068_v31  ;;  %v3662_v60 = vpack.c.bf16 %v1096_v53, %v1092_v32  ;;  %v775_v62 = vpop.f32.mrb[24].mxu1 }
 0x1a0   :  { %v696_v63 = vadd.f32 %v695_v58, %v3585_v7  ;;  %v697_v0 = vpop.f32.mrb[25].mxu0  ;;  %1788 = vmatprep.subr.bf16.mxu0 %v3073_v41  ;;  %v776_v10 = vadd.f32 %v775_v62, %v3585_v7  ;;  %v777_v12 = vpop.f32.mrb[25].mxu1 }
 0x1a1   :  { %v698_v14 = vadd.f32 %v697_v0, %v3590_v22  ;;  %v699_v16 = vpop.f32.mrb[26].mxu0  ;;  %1657 = vmatprep.mubr.bf16.mxu0 %v1136_v56  ;;  %v778_v17 = vadd.f32 %v777_v12, %v3590_v22  ;;  %v779_v18 = vpop.f32.mrb[26].mxu1  ;;  %v275_v56 = vsub.s32 3, %v3573_v48 }
 0x1a2   :  { %v700_v19 = vadd.f32 %v699_v16, %v3585_v7  ;;  %v701_v20 = vpop.f32.mrb[27].mxu0  ;;  %1658 = vmatmul.mubr.bf16.gmra.mrb[52].mxu0 %v1135_v54  ;;  %v1099_v21 = vmax.f32 %v776_v10, 0.0  ;;  %v780_v27 = vadd.f32 %v779_v18, %v3585_v7  ;;  %v781_v28 = vpop.f32.mrb[27].mxu1  ;;  %v1035_v38 = vmax.f32 %v696_v63, 0.0  ;;  %v3080_v10 = vld [vmem:[#allocation8 + $0x1d0] ss:$8 sps:$4 sm:$0xff]  }
 0x1a3   :  { %v702_v30 = vadd.f32 %v701_v20, %v3590_v22  ;;  %1789 = vmatpush1.bf16.msra.mxu0 %v3071_v59  ;;  %v1100_v37 = vmax.f32 %v778_v17, 0.0  ;;  %v782_v15 = vadd.f32 %v781_v28, %v3590_v22  ;;  %v1036_v23 = vmax.f32 %v698_v14, 0.0 }
 0x1a4   :  { %v1039_v47 = vmax.f32 %v700_v19, 0.0  ;;  %1790 = vmatprep.subr.bf16.mxu0 %v3076_v8  ;;  %v1103_v2 = vmax.f32 %v780_v27, 0.0  ;;  %v3085_v19 = vld [vmem:[#allocation8 + $0x1e4] ss:$8 sps:$4 sm:$0xff]   ;;  %v3687_v20 = vrot.slane %v3579_v3, %v271_v42 }
 0x1a5   :  { %v1040_v26 = vmax.f32 %v702_v30, 0.0  ;;  %v1104_v29 = vmax.f32 %v782_v15, 0.0  ;;  %v3083_v15 = vld [vmem:[#allocation8 + $0x1e0] ss:$8 sps:$4 sm:$0xff]  }
 0x1a6   :  { %v1139_v44 = vpack.c.bf16 %v1039_v47, %v1035_v38  ;;  %v3672_v46 = vpack.c.bf16 %v1103_v2, %v1099_v21  ;;  %v3088_v2 = vld [vmem:[#allocation8 + $0x1f4] ss:$8 sps:$4 sm:$0xff]  }
 0x1a7   :  { %v1140_v51 = vpack.c.bf16 %v1040_v26, %v1036_v23  ;;  %v705_v5 = vpop.f32.mrb[28].mxu0  ;;  %1791 = vmatpush1.bf16.msra.mxu0 %v3074_v36  ;;  %v3674_v11 = vpack.c.bf16 %v1104_v29, %v1100_v37  ;;  %v785_v31 = vpop.f32.mrb[28].mxu1 }
 0x1a8   :  { %v706_v32 = vadd.f32 %v705_v5, %v3585_v7  ;;  %v707_v35 = vpop.f32.mrb[29].mxu0  ;;  %1792 = vmatprep.subr.bf16.mxu0 %v3079_v49  ;;  %v786_v40 = vadd.f32 %v785_v31, %v3585_v7  ;;  %v787_v41 = vpop.f32.mrb[29].mxu1 }
 0x1a9   :  { %v708_v45 = vadd.f32 %v707_v35, %v3590_v22  ;;  %v709_v50 = vpop.f32.mrb[30].mxu0  ;;  %1667 = vmatprep.mubr.bf16.mxu0 %v1140_v51  ;;  %v788_v53 = vadd.f32 %v787_v41, %v3590_v22  ;;  %v789_v54 = vpop.f32.mrb[30].mxu1 }
 0x1aa   :  { %v710_v58 = vadd.f32 %v709_v50, %v3585_v7  ;;  %v711_v59 = vpop.f32.mrb[31].mxu0  ;;  %1668 = vmatmul.mubr.bf16.gmra.mrb[56].mxu0 %v1139_v44  ;;  %v1107_v62 = vmax.f32 %v786_v40, 0.0  ;;  %v790_v63 = vadd.f32 %v789_v54, %v3585_v7  ;;  %v791_v0 = vpop.f32.mrb[31].mxu1  ;;  %v1043_v16 = vmax.f32 %v706_v32, 0.0 }
 0x1ab   :  { %v712_v8 = vadd.f32 %v711_v59, %v3590_v22  ;;  %1793 = vmatpush1.bf16.msra.mxu0 %v3077_v6  ;;  %v1108_v12 = vmax.f32 %v788_v53, 0.0  ;;  %v792_v14 = vadd.f32 %v791_v0, %v3590_v22  ;;  %v1044_v21 = vmax.f32 %v708_v45, 0.0  ;;  %v3086_v6 = vld [vmem:[#allocation8 + $0x1f0] ss:$8 sps:$4 sm:$0xff]  }
 0x1ac   :  { %v1047_v17 = vmax.f32 %v710_v58, 0.0  ;;  %1794 = vmatprep.subr.bf16.mxu0 %v3082_v39  ;;  %v1111_v18 = vmax.f32 %v790_v63, 0.0  ;;  %v3690_v7 = vrot.slane %v3579_v3, %v275_v56 }
 0x1ad   :  { %v1048_v27 = vmax.f32 %v712_v8, 0.0  ;;  %v1112_v28 = vmax.f32 %v792_v14, 0.0 }
 0x1ae   :  { %v1143_v30 = vpack.c.bf16 %v1047_v17, %v1043_v16  ;;  %v3692_v36 = vpack.c.bf16 %v1111_v18, %v1107_v62 }
 0x1af   :  { %v1144_v37 = vpack.c.bf16 %v1048_v27, %v1044_v21  ;;  %1795 = vmatpush1.bf16.msra.mxu0 %v3080_v10  ;;  %v3694_v22 = vpack.c.bf16 %v1112_v28, %v1108_v12  ;;  %v828_v38 = vpop.f32.mrb[32].mxu1 }
 0x1b0   :  { %1796 = vmatprep.subr.bf16.mxu0 %v3085_v19  ;;  %v829_v47 = vadd.f32 %v828_v38, %v3687_v20  ;;  %v830_v49 = vpop.f32.mrb[33].mxu1 }
 0x1b1   :  { %1677 = vmatprep.mubr.bf16.mxu0 %v1144_v37  ;;  %v831_v23 = vadd.f32 %v830_v49, %v3690_v7  ;;  %v832_v26 = vpop.f32.mrb[34].mxu1 }
 0x1b2   :  { %1678 = vmatmul.mubr.bf16.gmra.mrb[60].mxu0 %v1143_v30  ;;  %v989_v3 = vmax.f32 %v829_v47, 0.0  ;;  %v833_v29 = vadd.f32 %v832_v26, %v3687_v20  ;;  %v834_v44 = vpop.f32.mrb[35].mxu1 }
 0x1b3   :  { %1687 = vmatprep.mubr.bf16.mxu0 %v3602_v61  ;;  %1797 = vmatpush1.bf16.msra.mxu0 %v3083_v15  ;;  %v990_v51 = vmax.f32 %v831_v23, 0.0  ;;  %v835_v5 = vadd.f32 %v834_v44, %v3690_v7 }
 0x1b4   :  { %v993_v31 = vmax.f32 %v833_v29, 0.0  ;;  %1798 = vmatprep.subr.bf16.mxu0 %v3088_v2 }
 0x1b5   :  { %v994_v32 = vmax.f32 %v835_v5, 0.0 }
 0x1b6   :  { %v3701_v35 = vpack.c.bf16 %v993_v31, %v989_v3 }
 0x1b7   :  { %v3703_v39 = vpack.c.bf16 %v994_v32, %v990_v51  ;;  %1799 = vmatpush1.bf16.msra.mxu0 %v3086_v6  ;;  %v838_v40 = vpop.f32.mrb[36].mxu1 }
 0x1b8   :  { %v839_v41 = vadd.f32 %v838_v40, %v3687_v20  ;;  %v840_v42 = vpop.f32.mrb[37].mxu1 }
 0x1b9   :  { %v841_v45 = vadd.f32 %v840_v42, %v3690_v7  ;;  %v842_v61 = vpop.f32.mrb[38].mxu1 }
 0x1ba   :  { %1688 = vmatmul.mubr.bf16.gmra.mrb[64].mxu0 %v3600_v57  ;;  %v997_v50 = vmax.f32 %v839_v41, 0.0  ;;  %v843_v53 = vadd.f32 %v842_v61, %v3687_v20  ;;  %v844_v54 = vpop.f32.mrb[39].mxu1  ;;  %v3089_v61 = vld [vmem:[#allocation10 + $0x40] sm:$0xff]  }
 0x1bb   :  { %1697 = vmatprep.mubr.bf16.mxu0 %v3614_v43  ;;  %v998_v56 = vmax.f32 %v841_v45, 0.0  ;;  %v845_v58 = vadd.f32 %v844_v54, %v3690_v7  ;;  %2613 = vmatprep.subr.bf16.mxu1 %v3089_v61 }
 0x1bc   :  { %v1001_v59 = vmax.f32 %v843_v53, 0.0 }
 0x1bd   :  { %v1002_v62 = vmax.f32 %v845_v58, 0.0 }
 0x1be   :  { %v3711_v63 = vpack.c.bf16 %v1001_v59, %v997_v50  ;;  %v3090_v50 = vld [vmem:[#allocation10] sm:$0xff]  }
 0x1bf   :  { %v3713_v0 = vpack.c.bf16 %v1002_v62, %v998_v56  ;;  %v848_v8 = vpop.f32.mrb[40].mxu1  ;;  %2614 = vmatpush3.bf16.msra.mxu1 %v3090_v50 }
 0x1c0   :  { %v849_v10 = vadd.f32 %v848_v8, %v3687_v20  ;;  %v850_v12 = vpop.f32.mrb[41].mxu1 }
 0x1c1   :  { %v851_v57 = vadd.f32 %v850_v12, %v3690_v7  ;;  %v852_v14 = vpop.f32.mrb[42].mxu1 }
 0x1c2   :  { %1698 = vmatmul.mubr.bf16.gmra.mrb[68].mxu0 %v3612_v24  ;;  %v1005_v16 = vmax.f32 %v849_v10, 0.0  ;;  %v853_v43 = vadd.f32 %v852_v14, %v3687_v20  ;;  %v854_v17 = vpop.f32.mrb[43].mxu1 }
 0x1c3   :  { %1707 = vmatprep.mubr.bf16.mxu0 %v3626_v13  ;;  %v1006_v18 = vmax.f32 %v851_v57, 0.0  ;;  %v855_v19 = vadd.f32 %v854_v17, %v3690_v7 }
 0x1c4   :  { %v1009_v21 = vmax.f32 %v853_v43, 0.0 }
 0x1c5   :  { %v1010_v27 = vmax.f32 %v855_v19, 0.0 }
 0x1c6   :  { %v3721_v28 = vpack.c.bf16 %v1009_v21, %v1005_v16 }
 0x1c7   :  { %v3723_v30 = vpack.c.bf16 %v1010_v27, %v1006_v18  ;;  %v858_v37 = vpop.f32.mrb[44].mxu1 }
 0x1c8   :  { %v859_v15 = vadd.f32 %v858_v37, %v3687_v20  ;;  %v860_v38 = vpop.f32.mrb[45].mxu1 }
 0x1c9   :  { %v861_v24 = vadd.f32 %v860_v38, %v3690_v7  ;;  %v862_v47 = vpop.f32.mrb[46].mxu1 }
 0x1ca   :  { %1708 = vmatmul.mubr.bf16.gmra.mrb[72].mxu0 %v3624_v1  ;;  %v1013_v49 = vmax.f32 %v859_v15, 0.0  ;;  %v863_v13 = vadd.f32 %v862_v47, %v3687_v20  ;;  %v864_v2 = vpop.f32.mrb[47].mxu1 }
 0x1cb   :  { %1717 = vmatprep.mubr.bf16.mxu0 %v3638_v34  ;;  %v1014_v23 = vmax.f32 %v861_v24, 0.0  ;;  %v865_v26 = vadd.f32 %v864_v2, %v3690_v7  ;;  %v3092_v2 = vld [vmem:[#allocation10 + $0x8] sm:$0xff]  }
 0x1cc   :  { %v1017_v3 = vmax.f32 %v863_v13, 0.0  ;;  %v3091_v13 = vld [vmem:[#allocation10 + $0x48] sm:$0xff]  }
 0x1cd   :  { %v1018_v29 = vmax.f32 %v865_v26, 0.0  ;;  %2615 = vmatprep.subr.bf16.mxu1 %v3091_v13  ;;  %v3099_v13 = vld [vmem:[#allocation10 + $0x68] sm:$0xff]  }
 0x1ce   :  { %v3731_v44 = vpack.c.bf16 %v1017_v3, %v1013_v49  ;;  %2616 = vmatpush3.bf16.msra.mxu1 %v3092_v2 }
 0x1cf   :  { %v3733_v51 = vpack.c.bf16 %v1018_v29, %v1014_v23  ;;  %v868_v5 = vpop.f32.mrb[48].mxu1 }
 0x1d0   :  { %v869_v6 = vadd.f32 %v868_v5, %v3687_v20  ;;  %v870_v31 = vpop.f32.mrb[49].mxu1 }
 0x1d1   :  { %v871_v1 = vadd.f32 %v870_v31, %v3690_v7  ;;  %v872_v32 = vpop.f32.mrb[50].mxu1 }
 0x1d2   :  { %1718 = vmatmul.mubr.bf16.gmra.mrb[76].mxu0 %v3636_v9  ;;  %v1021_v40 = vmax.f32 %v869_v6, 0.0  ;;  %v873_v34 = vadd.f32 %v872_v32, %v3687_v20  ;;  %v874_v41 = vpop.f32.mrb[51].mxu1 }
 0x1d3   :  { %1727 = vmatprep.mubr.bf16.mxu0 %v3650_v33  ;;  %v1022_v42 = vmax.f32 %v871_v1, 0.0  ;;  %v875_v45 = vadd.f32 %v874_v41, %v3690_v7 }
 0x1d4   :  { %v1025_v53 = vmax.f32 %v873_v34, 0.0 }
 0x1d5   :  { %v1026_v54 = vmax.f32 %v875_v45, 0.0 }
 0x1d6   :  { %v3741_v56 = vpack.c.bf16 %v1025_v53, %v1021_v40 }
 0x1d7   :  { %v3743_v58 = vpack.c.bf16 %v1026_v54, %v1022_v42  ;;  %v878_v9 = vpop.f32.mrb[52].mxu1 }
 0x1d8   :  { %v879_v59 = vadd.f32 %v878_v9, %v3687_v20  ;;  %v880_v62 = vpop.f32.mrb[53].mxu1 }
 0x1d9   :  { %v881_v8 = vadd.f32 %v880_v62, %v3690_v7  ;;  %v882_v33 = vpop.f32.mrb[54].mxu1 }
 0x1da   :  { %1728 = vmatmul.mubr.bf16.gmra.mrb[80].mxu0 %v3648_v25  ;;  %v1029_v10 = vmax.f32 %v879_v59, 0.0  ;;  %v883_v12 = vadd.f32 %v882_v33, %v3687_v20  ;;  %v884_v57 = vpop.f32.mrb[55].mxu1  ;;  %v3093_v33 = vld [vmem:[#allocation10 + $0x50] sm:$0xff]  }
 0x1db   :  { %1737 = vmatprep.mubr.bf16.mxu0 %v3662_v60  ;;  %v1030_v14 = vmax.f32 %v881_v8, 0.0  ;;  %v885_v16 = vadd.f32 %v884_v57, %v3690_v7  ;;  %2617 = vmatprep.subr.bf16.mxu1 %v3093_v33 }
 0x1dc   :  { %v1033_v43 = vmax.f32 %v883_v12, 0.0  ;;  %v3095_v12 = vld [vmem:[#allocation10 + $0x58] sm:$0xff]  }
 0x1dd   :  { %v1034_v17 = vmax.f32 %v885_v16, 0.0 }
 0x1de   :  { %v3751_v18 = vpack.c.bf16 %v1033_v43, %v1029_v10  ;;  %v3094_v10 = vld [vmem:[#allocation10 + $0x10] sm:$0xff]  }
 0x1df   :  { %v3753_v19 = vpack.c.bf16 %v1034_v17, %v1030_v14  ;;  %v888_v21 = vpop.f32.mrb[56].mxu1  ;;  %2618 = vmatpush3.bf16.msra.mxu1 %v3094_v10  ;;  %v3096_v17 = vld [vmem:[#allocation10 + $0x18] sm:$0xff]  }
 0x1e0   :  { %v889_v27 = vadd.f32 %v888_v21, %v3687_v20  ;;  %v890_v37 = vpop.f32.mrb[57].mxu1  ;;  %2619 = vmatprep.subr.bf16.mxu1 %v3095_v12 }
 0x1e1   :  { %v891_v25 = vadd.f32 %v890_v37, %v3690_v7  ;;  %v892_v15 = vpop.f32.mrb[58].mxu1 }
 0x1e2   :  { %1738 = vmatmul.mubr.bf16.gmra.mrb[84].mxu0 %v3660_v55  ;;  %v1037_v38 = vmax.f32 %v889_v27, 0.0  ;;  %v893_v60 = vadd.f32 %v892_v15, %v3687_v20  ;;  %v894_v24 = vpop.f32.mrb[59].mxu1 }
 0x1e3   :  { %1747 = vmatprep.mubr.bf16.mxu0 %v3674_v11  ;;  %v1038_v47 = vmax.f32 %v891_v25, 0.0  ;;  %v895_v49 = vadd.f32 %v894_v24, %v3690_v7  ;;  %2620 = vmatpush3.bf16.msra.mxu1 %v3096_v17 }
 0x1e4   :  { %v1041_v23 = vmax.f32 %v893_v60, 0.0  ;;  %v3098_v60 = vld [vmem:[#allocation10 + $0x20] sm:$0xff]  }
 0x1e5   :  { %v1042_v26 = vmax.f32 %v895_v49, 0.0 }
 0x1e6   :  { %v3761_v3 = vpack.c.bf16 %v1041_v23, %v1037_v38 }
 0x1e7   :  { %v3763_v29 = vpack.c.bf16 %v1042_v26, %v1038_v47  ;;  %v898_v55 = vpop.f32.mrb[60].mxu1 }
 0x1e8   :  { %v899_v5 = vadd.f32 %v898_v55, %v3687_v20  ;;  %v900_v6 = vpop.f32.mrb[61].mxu1 }
 0x1e9   :  { %v901_v31 = vadd.f32 %v900_v6, %v3690_v7  ;;  %v902_v11 = vpop.f32.mrb[62].mxu1 }
 0x1ea   :  { %1748 = vmatmul.mubr.bf16.gmra.mrb[88].mxu0 %v3672_v46  ;;  %v1045_v1 = vmax.f32 %v899_v5, 0.0  ;;  %v903_v32 = vadd.f32 %v902_v11, %v3687_v20  ;;  %v904_v40 = vpop.f32.mrb[63].mxu1  ;;  %v3100_v5 = vld [vmem:[#allocation10 + $0x28] sm:$0xff]  }
 0x1eb   :  { %1757 = vmatprep.mubr.bf16.mxu0 %v3694_v22  ;;  %v1046_v34 = vmax.f32 %v901_v31, 0.0  ;;  %v905_v41 = vadd.f32 %v904_v40, %v3690_v7  ;;  %v3101_v31 = vld [vmem:[#allocation10 + $0x70] sm:$0xff]  }
 0x1ec   :  { %v1049_v42 = vmax.f32 %v903_v32, 0.0 }
 0x1ed   :  { %v1050_v45 = vmax.f32 %v905_v41, 0.0 }
 0x1ee   :  { %v3771_v61 = vpack.c.bf16 %v1049_v42, %v1045_v1 }
 0x1ef   :  { %v3773_v50 = vpack.c.bf16 %v1050_v45, %v1046_v34  ;;  %v908_v53 = vpop.f32.mrb[64].mxu1  ;;  %v3102_v34 = vld [vmem:[#allocation10 + $0x30] sm:$0xff]  }
 0x1f0   :  { %v909_v54 = vadd.f32 %v908_v53, %v3687_v20  ;;  %v910_v9 = vpop.f32.mrb[65].mxu1  ;;  %v3103_v53 = vld [vmem:[#allocation10 + $0x78] sm:$0xff]  }
 0x1f1   :  { %v911_v46 = vadd.f32 %v910_v9, %v3690_v7  ;;  %v912_v59 = vpop.f32.mrb[66].mxu1 }
 0x1f2   :  { %1758 = vmatmul.mubr.bf16.gmra.mrb[92].mxu0 %v3692_v36  ;;  %v1053_v62 = vmax.f32 %v909_v54, 0.0  ;;  %v913_v22 = vadd.f32 %v912_v59, %v3687_v20  ;;  %v914_v8 = vpop.f32.mrb[67].mxu1  ;;  %v3097_v36 = vld [vmem:[#allocation10 + $0x60] sm:$0xff]  }
 0x1f3   :  { %1800 = vmatprep.mubr.bf16.mxu0 %v3703_v39  ;;  %v1054_v57 = vmax.f32 %v911_v46, 0.0  ;;  %v915_v14 = vadd.f32 %v914_v8, %v3690_v7  ;;  %2621 = vmatprep.subr.bf16.mxu1 %v3097_v36 }
 0x1f4   :  { %v1057_v16 = vmax.f32 %v913_v22, 0.0  ;;  %2622 = vmatpush3.bf16.msra.mxu1 %v3098_v60 }
 0x1f5   :  { %v1058_v43 = vmax.f32 %v915_v14, 0.0  ;;  %2623 = vmatprep.subr.bf16.mxu1 %v3099_v13 }
 0x1f6   :  { %v3781_v21 = vpack.c.bf16 %v1057_v16, %v1053_v62  ;;  %v3104_v62 = vld [vmem:[#allocation10 + $0x38] sm:$0xff]  }
 0x1f7   :  { %v3783_v27 = vpack.c.bf16 %v1058_v43, %v1054_v57  ;;  %v918_v37 = vpop.f32.mrb[68].mxu1 }
 0x1f8   :  { %v919_v25 = vadd.f32 %v918_v37, %v3687_v20  ;;  %v920_v15 = vpop.f32.mrb[69].mxu1  ;;  %2624 = vmatpush3.bf16.msra.mxu1 %v3100_v5 }
 0x1f9   :  { %v921_v39 = vadd.f32 %v920_v15, %v3690_v7  ;;  %v922_v38 = vpop.f32.mrb[70].mxu1  ;;  %2625 = vmatprep.subr.bf16.mxu1 %v3101_v31 }
 0x1fa   :  { %1801 = vmatmul.mubr.bf16.vlgmr.msra.gmra.mrb[32].mxu0 %v3701_v35  ;;  %v1061_v24 = vmax.f32 %v919_v25, 0.0  ;;  %v923_v47 = vadd.f32 %v922_v38, %v3687_v20  ;;  %v924_v49 = vpop.f32.mrb[71].mxu1 }
 0x1fb   :  { %1810 = vmatprep.mubr.bf16.mxu0 %v3713_v0  ;;  %v1062_v2 = vmax.f32 %v921_v39, 0.0  ;;  %v925_v23 = vadd.f32 %v924_v49, %v3690_v7 }
 0x1fc   :  { %v1065_v26 = vmax.f32 %v923_v47, 0.0  ;;  %2626 = vmatpush3.bf16.msra.mxu1 %v3102_v34 }
 0x1fd   :  { %v1066_v55 = vmax.f32 %v925_v23, 0.0  ;;  %2627 = vmatprep.subr.bf16.mxu1 %v3103_v53 }
 0x1fe   :  { %v3791_v6 = vpack.c.bf16 %v1065_v26, %v1061_v24 }
 0x1ff   :  { %v3793_v35 = vpack.c.bf16 %v1066_v55, %v1062_v2  ;;  %v928_v11 = vpop.f32.mrb[72].mxu1 }
 0x200   :  { %v929_v1 = vadd.f32 %v928_v11, %v3687_v20  ;;  %v930_v32 = vpop.f32.mrb[73].mxu1  ;;  %2628 = vmatpush3.bf16.msra.mxu1 %v3104_v62 }
 0x201   :  { %v931_v40 = vadd.f32 %v930_v32, %v3690_v7  ;;  %v932_v0 = vpop.f32.mrb[74].mxu1 }
 0x202   :  { %1811 = vmatmul.mubr.bf16.gmra.mrb[36].mxu0 %v3711_v63  ;;  %v1069_v41 = vmax.f32 %v929_v1, 0.0  ;;  %v933_v42 = vadd.f32 %v932_v0, %v3687_v20  ;;  %v934_v45 = vpop.f32.mrb[75].mxu1 }
 0x203   :  { %1820 = vmatprep.mubr.bf16.mxu0 %v3723_v30  ;;  %v1070_v54 = vmax.f32 %v931_v40, 0.0  ;;  %v935_v9 = vadd.f32 %v934_v45, %v3690_v7 }
 0x204   :  { %v1073_v46 = vmax.f32 %v933_v42, 0.0 }
 0x205   :  { %v1074_v59 = vmax.f32 %v935_v9, 0.0 }
 0x206   :  { %v3801_v22 = vpack.c.bf16 %v1073_v46, %v1069_v41 }
 0x207   :  { %v3803_v8 = vpack.c.bf16 %v1074_v59, %v1070_v54  ;;  %v938_v63 = vpop.f32.mrb[76].mxu1 }
 0x208   :  { %v939_v33 = vadd.f32 %v938_v63, %v3687_v20  ;;  %v940_v10 = vpop.f32.mrb[77].mxu1 }
 0x209   :  { %v941_v12 = vadd.f32 %v940_v10, %v3690_v7  ;;  %v942_v57 = vpop.f32.mrb[78].mxu1 }
 0x20a   :  { %1821 = vmatmul.mubr.bf16.gmra.mrb[40].mxu0 %v3721_v28  ;;  %v1077_v30 = vmax.f32 %v939_v33, 0.0  ;;  %v943_v14 = vadd.f32 %v942_v57, %v3687_v20  ;;  %v944_v16 = vpop.f32.mrb[79].mxu1 }
 0x20b   :  { %1830 = vmatprep.mubr.bf16.mxu0 %v3733_v51  ;;  %v1078_v43 = vmax.f32 %v941_v12, 0.0  ;;  %v945_v17 = vadd.f32 %v944_v16, %v3690_v7 }
 0x20c   :  { %v1081_v36 = vmax.f32 %v943_v14, 0.0 }
 0x20d   :  { %v1082_v37 = vmax.f32 %v945_v17, 0.0 }
 0x20e   :  { %v3811_v25 = vpack.c.bf16 %v1081_v36, %v1077_v30 }
 0x20f   :  { %v3813_v15 = vpack.c.bf16 %v1082_v37, %v1078_v43  ;;  %v948_v39 = vpop.f32.mrb[80].mxu1 }
 0x210   :  { %v949_v38 = vadd.f32 %v948_v39, %v3687_v20  ;;  %v950_v60 = vpop.f32.mrb[81].mxu1 }
 0x211   :  { %v951_v28 = vadd.f32 %v950_v60, %v3690_v7  ;;  %v952_v24 = vpop.f32.mrb[82].mxu1 }
 0x212   :  { %1831 = vmatmul.mubr.bf16.gmra.mrb[44].mxu0 %v3731_v44  ;;  %v1085_v47 = vmax.f32 %v949_v38, 0.0  ;;  %v953_v51 = vadd.f32 %v952_v24, %v3687_v20  ;;  %v954_v49 = vpop.f32.mrb[83].mxu1 }
 0x213   :  { %1840 = vmatprep.mubr.bf16.mxu0 %v3743_v58  ;;  %v1086_v13 = vmax.f32 %v951_v28, 0.0  ;;  %v955_v2 = vadd.f32 %v954_v49, %v3690_v7 }
 0x214   :  { %v1089_v23 = vmax.f32 %v953_v51, 0.0 }
 0x215   :  { %v1090_v26 = vmax.f32 %v955_v2, 0.0 }
 0x216   :  { %v1165_v55 = vpack.c.bf16 %v1089_v23, %v1085_v47 }
 0x217   :  { %v1166_v5 = vpack.c.bf16 %v1090_v26, %v1086_v13  ;;  %v958_v31 = vpop.f32.mrb[84].mxu1 }
 0x218   :  { %v959_v11 = vadd.f32 %v958_v31, %v3687_v20  ;;  %v960_v1 = vpop.f32.mrb[85].mxu1 }
 0x219   :  { %v961_v32 = vadd.f32 %v960_v1, %v3690_v7  ;;  %v962_v44 = vpop.f32.mrb[86].mxu1 }
 0x21a   :  { %1841 = vmatmul.mubr.bf16.gmra.mrb[48].mxu0 %v3741_v56  ;;  %v1093_v40 = vmax.f32 %v959_v11, 0.0  ;;  %v963_v0 = vadd.f32 %v962_v44, %v3687_v20  ;;  %v964_v58 = vpop.f32.mrb[87].mxu1 }
 0x21b   :  { %1850 = vmatprep.mubr.bf16.mxu0 %v3753_v19  ;;  %v1094_v34 = vmax.f32 %v961_v32, 0.0  ;;  %v965_v41 = vadd.f32 %v964_v58, %v3690_v7 }
 0x21c   :  { %v1097_v42 = vmax.f32 %v963_v0, 0.0 }
 0x21d   :  { %v1098_v45 = vmax.f32 %v965_v41, 0.0 }
 0x21e   :  { %v1169_v53 = vpack.c.bf16 %v1097_v42, %v1093_v40 }
 0x21f   :  { %v1170_v54 = vpack.c.bf16 %v1098_v45, %v1094_v34  ;;  %v968_v9 = vpop.f32.mrb[88].mxu1 }
 0x220   :  { %v969_v46 = vadd.f32 %v968_v9, %v3687_v20  ;;  %v970_v59 = vpop.f32.mrb[89].mxu1 }
 0x221   :  { %v971_v62 = vadd.f32 %v970_v59, %v3690_v7  ;;  %v972_v56 = vpop.f32.mrb[90].mxu1 }
 0x222   :  { %1851 = vmatmul.mubr.bf16.gmra.mrb[52].mxu0 %v3751_v18  ;;  %v1101_v63 = vmax.f32 %v969_v46, 0.0  ;;  %v973_v33 = vadd.f32 %v972_v56, %v3687_v20  ;;  %v974_v19 = vpop.f32.mrb[91].mxu1 }
 0x223   :  { %1860 = vmatprep.mubr.bf16.mxu0 %v3763_v29  ;;  %v1102_v10 = vmax.f32 %v971_v62, 0.0  ;;  %v975_v12 = vadd.f32 %v974_v19, %v3690_v7 }
 0x224   :  { %v1105_v57 = vmax.f32 %v973_v33, 0.0 }
 0x225   :  { %v1106_v30 = vmax.f32 %v975_v12, 0.0 }
 0x226   :  { %v1173_v14 = vpack.c.bf16 %v1105_v57, %v1101_v63 }
 0x227   :  { %v1174_v16 = vpack.c.bf16 %v1106_v30, %v1102_v10  ;;  %v978_v43 = vpop.f32.mrb[92].mxu1 }
 0x228   :  { %v979_v17 = vadd.f32 %v978_v43, %v3687_v20  ;;  %v980_v36 = vpop.f32.mrb[93].mxu1 }
 0x229   :  { %v981_v37 = vadd.f32 %v980_v36, %v3690_v7  ;;  %v982_v18 = vpop.f32.mrb[94].mxu1 }
 0x22a   :  { %1861 = vmatmul.mubr.bf16.gmra.mrb[56].mxu0 %v3761_v3  ;;  %v1109_v39 = vmax.f32 %v979_v17, 0.0  ;;  %v983_v38 = vadd.f32 %v982_v18, %v3687_v20  ;;  %v984_v29 = vpop.f32.mrb[95].mxu1  ;;  %v1243_v20 = vld [vmem:[%s3980_s5] sm:$0x3] }
 0x22b   :  { %1870 = vmatprep.mubr.bf16.mxu0 %v3773_v50  ;;  %v1110_v60 = vmax.f32 %v981_v37, 0.0  ;;  %v985_v28 = vadd.f32 %v984_v29, %v3690_v7  ;;  %v3853_v7 = vrot.slane %v1243_v20, %v263_v52  ;;  %v3857_v3 = vrot.slane %v1243_v20, %v267_v4 }
 0x22c   :  { %v1113_v24 = vmax.f32 %v983_v38, 0.0 }
 0x22d   :  { %v1114_v47 = vmax.f32 %v985_v28, 0.0 }
 0x22e   :  { %v1177_v51 = vpack.c.bf16 %v1113_v24, %v1109_v39 }
 0x22f   :  { %v1178_v49 = vpack.c.bf16 %v1114_v47, %v1110_v60 }
 0x232   :  { %1871 = vmatmul.mubr.bf16.gmra.mrb[60].mxu0 %v3771_v61 }
 0x233   :  { %1880 = vmatprep.mubr.bf16.mxu0 %v3783_v27 }
 0x23a   :  { %1881 = vmatmul.mubr.bf16.gmra.mrb[64].mxu0 %v3781_v21 }
 0x23b   :  { %1890 = vmatprep.mubr.bf16.mxu0 %v3793_v35 }
 0x242   :  { %1891 = vmatmul.mubr.bf16.gmra.mrb[68].mxu0 %v3791_v6 }
 0x243   :  { %1900 = vmatprep.mubr.bf16.mxu0 %v3803_v8 }
 0x24a   :  { %1901 = vmatmul.mubr.bf16.gmra.mrb[72].mxu0 %v3801_v22 }
 0x24b   :  { %1910 = vmatprep.mubr.bf16.mxu0 %v3813_v15 }
 0x252   :  { %1911 = vmatmul.mubr.bf16.gmra.mrb[76].mxu0 %v3811_v25 }
 0x253   :  { %1920 = vmatprep.mubr.bf16.mxu0 %v1166_v5 }
 0x25a   :  { %1921 = vmatmul.mubr.bf16.gmra.mrb[80].mxu0 %v1165_v55 }
 0x25b   :  { %1930 = vmatprep.mubr.bf16.mxu0 %v1170_v54 }
 0x262   :  { %1931 = vmatmul.mubr.bf16.gmra.mrb[84].mxu0 %v1169_v53 }
 0x263   :  { %1940 = vmatprep.mubr.bf16.mxu0 %v1174_v16 }
 0x26a   :  { %1941 = vmatmul.mubr.bf16.gmra.mrb[88].mxu0 %v1173_v14 }
 0x26b   :  { %1950 = vmatprep.mubr.bf16.mxu0 %v1178_v49 }
 0x272   :  { %1951 = vmatmul.mubr.bf16.gmra.mrb[92].mxu0 %v1177_v51 }
 0x2cd   :  { %v1802_v61 = vpop.f32.mrb[32].mxu0 }
 0x2ce   :  { %v2757_v50 = vadd.f32 %v1802_v61, %v3853_v7  ;;  %v1804_v21 = vpop.f32.mrb[33].mxu0 }
 0x2cf   :  { %v2758_v27 = vadd.f32 %v1804_v21, %v3857_v3  ;;  %v1806_v6 = vpop.f32.mrb[34].mxu0 }
 0x2d0   :  { %v2759_v35 = vadd.f32 %v1806_v6, %v3853_v7  ;;  %v1808_v22 = vpop.f32.mrb[35].mxu0  ;;  %v1961_v25 = vmax.f32 %v2757_v50, 0.0 }
 0x2d1   :  { %v2760_v8 = vadd.f32 %v1808_v22, %v3857_v3  ;;  %v1962_v52 = vmax.f32 %v2758_v27, 0.0 }
 0x2d2   :  { %v1963_v15 = vmax.f32 %v2759_v35, 0.0 }
 0x2d3   :  { %v1964_v13 = vmax.f32 %v2760_v8, 0.0 }
 0x2d4   :  { %v2025_v2 = vpack.c.bf16 %v1963_v15, %v1961_v25 }
 0x2d5   :  { %v2026_v48 = vpack.c.bf16 %v1964_v13, %v1962_v52  ;;  %v1812_v4 = vpop.f32.mrb[36].mxu0 }
 0x2d6   :  { %v2761_v23 = vadd.f32 %v1812_v4, %v3853_v7  ;;  %v1814_v26 = vpop.f32.mrb[37].mxu0 }
 0x2d7   :  { %v2762_v55 = vadd.f32 %v1814_v26, %v3857_v3  ;;  %v1816_v5 = vpop.f32.mrb[38].mxu0  ;;  %2224 = vmatprep.mubr.bf16.mxu1 %v2026_v48 }
 0x2d8   :  { %v2763_v31 = vadd.f32 %v1816_v5, %v3853_v7  ;;  %v1818_v11 = vpop.f32.mrb[39].mxu0  ;;  %2225 = vmatmul.mubr.bf16.vlgmr.msra.gmra.mrb[96].mxu1 %v2025_v2  ;;  %v1965_v32 = vmax.f32 %v2761_v23, 0.0 }
 0x2d9   :  { %v2764_v1 = vadd.f32 %v1818_v11, %v3857_v3  ;;  %v1966_v40 = vmax.f32 %v2762_v55, 0.0 }
 0x2da   :  { %v1967_v44 = vmax.f32 %v2763_v31, 0.0 }
 0x2db   :  { %v1968_v0 = vmax.f32 %v2764_v1, 0.0 }
 0x2dc   :  { %v2027_v58 = vpack.c.bf16 %v1967_v44, %v1965_v32 }
 0x2dd   :  { %v2028_v34 = vpack.c.bf16 %v1968_v0, %v1966_v40  ;;  %v1822_v41 = vpop.f32.mrb[40].mxu0 }
 0x2de   :  { %v2765_v42 = vadd.f32 %v1822_v41, %v3853_v7  ;;  %v1824_v45 = vpop.f32.mrb[41].mxu0 }
 0x2df   :  { %v2766_v53 = vadd.f32 %v1824_v45, %v3857_v3  ;;  %v1826_v54 = vpop.f32.mrb[42].mxu0  ;;  %2232 = vmatprep.mubr.bf16.mxu1 %v2028_v34 }
 0x2e0   :  { %v2767_v9 = vadd.f32 %v1826_v54, %v3853_v7  ;;  %v1828_v46 = vpop.f32.mrb[43].mxu0  ;;  %2233 = vmatmul.mubr.bf16.gmra.mrb[100].mxu1 %v2027_v58  ;;  %v1969_v62 = vmax.f32 %v2765_v42, 0.0 }
 0x2e1   :  { %v2768_v59 = vadd.f32 %v1828_v46, %v3857_v3  ;;  %v1970_v63 = vmax.f32 %v2766_v53, 0.0 }
 0x2e2   :  { %v1971_v56 = vmax.f32 %v2767_v9, 0.0 }
 0x2e3   :  { %v1972_v33 = vmax.f32 %v2768_v59, 0.0 }
 0x2e4   :  { %v2029_v19 = vpack.c.bf16 %v1971_v56, %v1969_v62 }
 0x2e5   :  { %v2030_v10 = vpack.c.bf16 %v1972_v33, %v1970_v63  ;;  %v1832_v12 = vpop.f32.mrb[44].mxu0 }
 0x2e6   :  { %v2769_v57 = vadd.f32 %v1832_v12, %v3853_v7  ;;  %v1834_v30 = vpop.f32.mrb[45].mxu0 }
 0x2e7   :  { %v2770_v14 = vadd.f32 %v1834_v30, %v3857_v3  ;;  %v1836_v16 = vpop.f32.mrb[46].mxu0  ;;  %2240 = vmatprep.mubr.bf16.mxu1 %v2030_v10 }
 0x2e8   :  { %v2771_v43 = vadd.f32 %v1836_v16, %v3853_v7  ;;  %v1838_v17 = vpop.f32.mrb[47].mxu0  ;;  %2241 = vmatmul.mubr.bf16.gmra.mrb[104].mxu1 %v2029_v19  ;;  %v1973_v37 = vmax.f32 %v2769_v57, 0.0 }
 0x2e9   :  { %v2772_v36 = vadd.f32 %v1838_v17, %v3857_v3  ;;  %v1974_v39 = vmax.f32 %v2770_v14, 0.0 }
 0x2ea   :  { %v1975_v18 = vmax.f32 %v2771_v43, 0.0 }
 0x2eb   :  { %v1976_v38 = vmax.f32 %v2772_v36, 0.0 }
 0x2ec   :  { %v2031_v29 = vpack.c.bf16 %v1975_v18, %v1973_v37 }
 0x2ed   :  { %v2032_v60 = vpack.c.bf16 %v1976_v38, %v1974_v39  ;;  %v1842_v28 = vpop.f32.mrb[48].mxu0 }
 0x2ee   :  { %v2773_v24 = vadd.f32 %v1842_v28, %v3853_v7  ;;  %v1844_v47 = vpop.f32.mrb[49].mxu0 }
 0x2ef   :  { %v2774_v51 = vadd.f32 %v1844_v47, %v3857_v3  ;;  %v1846_v49 = vpop.f32.mrb[50].mxu0  ;;  %2248 = vmatprep.mubr.bf16.mxu1 %v2032_v60 }
 0x2f0   :  { %v2775_v20 = vadd.f32 %v1846_v49, %v3853_v7  ;;  %v1848_v61 = vpop.f32.mrb[51].mxu0  ;;  %2249 = vmatmul.mubr.bf16.gmra.mrb[108].mxu1 %v2031_v29  ;;  %v1977_v21 = vmax.f32 %v2773_v24, 0.0 }
 0x2f1   :  { %v2776_v50 = vadd.f32 %v1848_v61, %v3857_v3  ;;  %v1978_v6 = vmax.f32 %v2774_v51, 0.0 }
 0x2f2   :  { %v1979_v27 = vmax.f32 %v2775_v20, 0.0 }
 0x2f3   :  { %v1980_v35 = vmax.f32 %v2776_v50, 0.0 }
 0x2f4   :  { %v2033_v22 = vpack.c.bf16 %v1979_v27, %v1977_v21 }
 0x2f5   :  { %v2034_v8 = vpack.c.bf16 %v1980_v35, %v1978_v6  ;;  %v1852_v25 = vpop.f32.mrb[52].mxu0 }
 0x2f6   :  { %v2777_v15 = vadd.f32 %v1852_v25, %v3853_v7  ;;  %v1854_v52 = vpop.f32.mrb[53].mxu0 }
 0x2f7   :  { %v2778_v13 = vadd.f32 %v1854_v52, %v3857_v3  ;;  %v1856_v2 = vpop.f32.mrb[54].mxu0  ;;  %2256 = vmatprep.mubr.bf16.mxu1 %v2034_v8 }
 0x2f8   :  { %v2779_v48 = vadd.f32 %v1856_v2, %v3853_v7  ;;  %v1858_v4 = vpop.f32.mrb[55].mxu0  ;;  %2257 = vmatmul.mubr.bf16.gmra.mrb[112].mxu1 %v2033_v22  ;;  %v1981_v26 = vmax.f32 %v2777_v15, 0.0 }
 0x2f9   :  { %v2780_v23 = vadd.f32 %v1858_v4, %v3857_v3  ;;  %v1982_v5 = vmax.f32 %v2778_v13, 0.0 }
 0x2fa   :  { %v1983_v55 = vmax.f32 %v2779_v48, 0.0 }
 0x2fb   :  { %v1984_v31 = vmax.f32 %v2780_v23, 0.0 }
 0x2fc   :  { %v2035_v11 = vpack.c.bf16 %v1983_v55, %v1981_v26 }
 0x2fd   :  { %v2036_v1 = vpack.c.bf16 %v1984_v31, %v1982_v5  ;;  %v1862_v32 = vpop.f32.mrb[56].mxu0 }
 0x2fe   :  { %v2781_v44 = vadd.f32 %v1862_v32, %v3853_v7  ;;  %v1864_v40 = vpop.f32.mrb[57].mxu0 }
 0x2ff   :  { %v2782_v0 = vadd.f32 %v1864_v40, %v3857_v3  ;;  %v1866_v58 = vpop.f32.mrb[58].mxu0  ;;  %2264 = vmatprep.mubr.bf16.mxu1 %v2036_v1 }
 0x300   :  { %v2783_v34 = vadd.f32 %v1866_v58, %v3853_v7  ;;  %v1868_v41 = vpop.f32.mrb[59].mxu0  ;;  %2265 = vmatmul.mubr.bf16.gmra.mrb[116].mxu1 %v2035_v11  ;;  %v1985_v45 = vmax.f32 %v2781_v44, 0.0 }
 0x301   :  { %v2784_v42 = vadd.f32 %v1868_v41, %v3857_v3  ;;  %v1986_v54 = vmax.f32 %v2782_v0, 0.0 }
 0x302   :  { %v1987_v53 = vmax.f32 %v2783_v34, 0.0 }
 0x303   :  { %v1988_v9 = vmax.f32 %v2784_v42, 0.0 }
 0x304   :  { %v2037_v46 = vpack.c.bf16 %v1987_v53, %v1985_v45 }
 0x305   :  { %v2038_v59 = vpack.c.bf16 %v1988_v9, %v1986_v54  ;;  %v1872_v62 = vpop.f32.mrb[60].mxu0 }
 0x306   :  { %v2785_v56 = vadd.f32 %v1872_v62, %v3853_v7  ;;  %v1874_v63 = vpop.f32.mrb[61].mxu0 }
 0x307   :  { %v2786_v33 = vadd.f32 %v1874_v63, %v3857_v3  ;;  %v1876_v19 = vpop.f32.mrb[62].mxu0  ;;  %2272 = vmatprep.mubr.bf16.mxu1 %v2038_v59 }
 0x308   :  { %v2787_v10 = vadd.f32 %v1876_v19, %v3853_v7  ;;  %v1878_v12 = vpop.f32.mrb[63].mxu0  ;;  %2273 = vmatmul.mubr.bf16.gmra.mrb[120].mxu1 %v2037_v46  ;;  %v1989_v30 = vmax.f32 %v2785_v56, 0.0 }
 0x309   :  { %v2788_v57 = vadd.f32 %v1878_v12, %v3857_v3  ;;  %v1990_v16 = vmax.f32 %v2786_v33, 0.0 }
 0x30a   :  { %v1991_v14 = vmax.f32 %v2787_v10, 0.0 }
 0x30b   :  { %v1992_v43 = vmax.f32 %v2788_v57, 0.0 }
 0x30c   :  { %v2039_v17 = vpack.c.bf16 %v1991_v14, %v1989_v30 }
 0x30d   :  { %v2040_v36 = vpack.c.bf16 %v1992_v43, %v1990_v16  ;;  %v1882_v37 = vpop.f32.mrb[64].mxu0 }
 0x30e   :  { %v2789_v18 = vadd.f32 %v1882_v37, %v3853_v7  ;;  %v1884_v39 = vpop.f32.mrb[65].mxu0 }
 0x30f   :  { %v2790_v38 = vadd.f32 %v1884_v39, %v3857_v3  ;;  %v1886_v29 = vpop.f32.mrb[66].mxu0  ;;  %2280 = vmatprep.mubr.bf16.mxu1 %v2040_v36 }
 0x310   :  { %v2791_v60 = vadd.f32 %v1886_v29, %v3853_v7  ;;  %v1888_v28 = vpop.f32.mrb[67].mxu0  ;;  %2281 = vmatmul.mubr.bf16.gmra.mrb[124].mxu1 %v2039_v17  ;;  %v1993_v47 = vmax.f32 %v2789_v18, 0.0 }
 0x311   :  { %v2792_v24 = vadd.f32 %v1888_v28, %v3857_v3  ;;  %v1994_v49 = vmax.f32 %v2790_v38, 0.0 }
 0x312   :  { %v1995_v51 = vmax.f32 %v2791_v60, 0.0 }
 0x313   :  { %v1996_v20 = vmax.f32 %v2792_v24, 0.0 }
 0x314   :  { %v2041_v61 = vpack.c.bf16 %v1995_v51, %v1993_v47 }
 0x315   :  { %v2042_v50 = vpack.c.bf16 %v1996_v20, %v1994_v49  ;;  %v1892_v21 = vpop.f32.mrb[68].mxu0 }
 0x316   :  { %v2793_v27 = vadd.f32 %v1892_v21, %v3853_v7  ;;  %v1894_v6 = vpop.f32.mrb[69].mxu0 }
 0x317   :  { %v2794_v35 = vadd.f32 %v1894_v6, %v3857_v3  ;;  %v1896_v22 = vpop.f32.mrb[70].mxu0  ;;  %2288 = vmatprep.mubr.bf16.mxu1 %v2042_v50 }
 0x318   :  { %v2795_v8 = vadd.f32 %v1896_v22, %v3853_v7  ;;  %v1898_v25 = vpop.f32.mrb[71].mxu0  ;;  %2289 = vmatmul.mubr.bf16.gmra.mrb[128].mxu1 %v2041_v61  ;;  %v1997_v52 = vmax.f32 %v2793_v27, 0.0 }
 0x319   :  { %v2796_v15 = vadd.f32 %v1898_v25, %v3857_v3  ;;  %v1998_v2 = vmax.f32 %v2794_v35, 0.0 }
 0x31a   :  { %v1999_v13 = vmax.f32 %v2795_v8, 0.0 }
 0x31b   :  { %v2000_v48 = vmax.f32 %v2796_v15, 0.0 }
 0x31c   :  { %v2043_v4 = vpack.c.bf16 %v1999_v13, %v1997_v52 }
 0x31d   :  { %v2044_v23 = vpack.c.bf16 %v2000_v48, %v1998_v2  ;;  %v1902_v26 = vpop.f32.mrb[72].mxu0 }
 0x31e   :  { %v2797_v55 = vadd.f32 %v1902_v26, %v3853_v7  ;;  %v1904_v5 = vpop.f32.mrb[73].mxu0 }
 0x31f   :  { %v2798_v31 = vadd.f32 %v1904_v5, %v3857_v3  ;;  %v1906_v11 = vpop.f32.mrb[74].mxu0  ;;  %2296 = vmatprep.mubr.bf16.mxu1 %v2044_v23 }
 0x320   :  { %v2799_v1 = vadd.f32 %v1906_v11, %v3853_v7  ;;  %v1908_v32 = vpop.f32.mrb[75].mxu0  ;;  %2297 = vmatmul.mubr.bf16.gmra.mrb[132].mxu1 %v2043_v4  ;;  %v2001_v40 = vmax.f32 %v2797_v55, 0.0 }
 0x321   :  { %v2800_v44 = vadd.f32 %v1908_v32, %v3857_v3  ;;  %v2002_v58 = vmax.f32 %v2798_v31, 0.0 }
 0x322   :  { %v2003_v0 = vmax.f32 %v2799_v1, 0.0 }
 0x323   :  { %v2004_v34 = vmax.f32 %v2800_v44, 0.0 }
 0x324   :  { %v2045_v41 = vpack.c.bf16 %v2003_v0, %v2001_v40 }
 0x325   :  { %v2046_v42 = vpack.c.bf16 %v2004_v34, %v2002_v58  ;;  %v1912_v45 = vpop.f32.mrb[76].mxu0 }
 0x326   :  { %v2801_v53 = vadd.f32 %v1912_v45, %v3853_v7  ;;  %v1914_v54 = vpop.f32.mrb[77].mxu0 }
 0x327   :  { %v2802_v9 = vadd.f32 %v1914_v54, %v3857_v3  ;;  %v1916_v46 = vpop.f32.mrb[78].mxu0  ;;  %2304 = vmatprep.mubr.bf16.mxu1 %v2046_v42 }
 0x328   :  { %v2803_v59 = vadd.f32 %v1916_v46, %v3853_v7  ;;  %v1918_v62 = vpop.f32.mrb[79].mxu0  ;;  %2305 = vmatmul.mubr.bf16.gmra.mrb[136].mxu1 %v2045_v41  ;;  %v2005_v63 = vmax.f32 %v2801_v53, 0.0 }
 0x329   :  { %v2804_v56 = vadd.f32 %v1918_v62, %v3857_v3  ;;  %v2006_v19 = vmax.f32 %v2802_v9, 0.0 }
 0x32a   :  { %v2007_v33 = vmax.f32 %v2803_v59, 0.0 }
 0x32b   :  { %v2008_v10 = vmax.f32 %v2804_v56, 0.0 }
 0x32c   :  { %v2047_v12 = vpack.c.bf16 %v2007_v33, %v2005_v63  ;;  %v3926_v33 = vld [vmem:[%s3982_s7] ss:$0 sm:$0xff]  ;;  %s3320_s7 = smov [#allocation11]  }
 0x32d   :  { %v2048_v57 = vpack.c.bf16 %v2008_v10, %v2006_v19  ;;  %v1922_v30 = vpop.f32.mrb[80].mxu0  ;;  %s2454_s29 = sshll.u32 %s3320_s7, 4  ;;  %s2455_s29 = int_to_ptr.vmem [resolvable:$true] %s2454_s29 }
 0x32e   :  { %v2805_v14 = vadd.f32 %v1922_v30, %v3853_v7  ;;  %v1924_v16 = vpop.f32.mrb[81].mxu0  ;;  %v3105_v30 = vld [vmem:[#allocation5] sm:$0xff]  ;;  %s3279_s1 = scalar_lea.vmem %s2455_s29, 4096  ;;  %p3284_p13 = scmp.lt.s32.totalorder %s2455_s29, %s2455_s29 }
 0x32f   :  { %v2806_v43 = vadd.f32 %v1924_v16, %v3857_v3  ;;  %v1926_v17 = vpop.f32.mrb[82].mxu0  ;;  %2312 = vmatprep.mubr.bf16.mxu1 %v2048_v57  ;;  %p3280_p12 = scmp.ne.s32.totalorder %s2455_s29, %s3279_s1  ;;  %p3285_p0 = scmp.lt.s32.totalorder %s3279_s1, %s3279_s1 }
 0x330   :  { %v2807_v36 = vadd.f32 %v1926_v17, %v3853_v7  ;;  %v1928_v37 = vpop.f32.mrb[83].mxu0  ;;  %2313 = vmatmul.mubr.bf16.gmra.mrb[140].mxu1 %v2047_v12  ;;  %v2009_v39 = vmax.f32 %v2805_v14, 0.0 }
 0x331   :  { %v2808_v18 = vadd.f32 %v1928_v37, %v3857_v3  ;;  %v2010_v29 = vmax.f32 %v2806_v43, 0.0  ;;  %v3106_v43 = vld [vmem:[#allocation2] sm:$0xff]  ;;  %p3286_p1 = por %p3285_p0, %p3284_p13 }
 0x332   :  { %v2011_v38 = vmax.f32 %v2807_v36, 0.0  ;;  %v3107_v36 = vld [vmem:[#allocation5 + $0x8] sm:$0xff] }
 0x333   :  { %v2012_v60 = vmax.f32 %v2808_v18, 0.0  ;;  %p3287_p2 = pnand %p3286_p1, %p3280_p12 }
 0x334   :  { %v2049_v28 = vpack.c.bf16 %v2011_v38, %v2009_v39  ;;  %v3108_v38 = vld [vmem:[#allocation2 + $0x8] sm:$0xff] }
 0x335   :  { %v2050_v24 = vpack.c.bf16 %v2012_v60, %v2010_v29  ;;  %v1932_v47 = vpop.f32.mrb[84].mxu0 }
 0x336   :  { %v2809_v51 = vadd.f32 %v1932_v47, %v3853_v7  ;;  %v1934_v49 = vpop.f32.mrb[85].mxu0 }
 0x337   :  { %v2810_v20 = vadd.f32 %v1934_v49, %v3857_v3  ;;  %v1936_v61 = vpop.f32.mrb[86].mxu0  ;;  %2320 = vmatprep.mubr.bf16.mxu1 %v2050_v24  ;;  %v3109_v49 = vld [vmem:[#allocation5 + $0x10] sm:$0xff] }
 0x338   :  { %v2811_v50 = vadd.f32 %v1936_v61, %v3853_v7  ;;  %v1938_v21 = vpop.f32.mrb[87].mxu0  ;;  %2321 = vmatmul.mubr.bf16.gmra.mrb[144].mxu1 %v2049_v28  ;;  %v2013_v6 = vmax.f32 %v2809_v51, 0.0 }
 0x339   :  { %v2812_v27 = vadd.f32 %v1938_v21, %v3857_v3  ;;  %v2014_v22 = vmax.f32 %v2810_v20, 0.0 }
 0x33a   :  { %v2015_v35 = vmax.f32 %v2811_v50, 0.0  ;;  %v3110_v50 = vld [vmem:[#allocation2 + $0x10] sm:$0xff] }
 0x33b   :  { %v2016_v8 = vmax.f32 %v2812_v27, 0.0  ;;  %v3111_v27 = vld [vmem:[#allocation5 + $0x18] sm:$0xff] }
 0x33c   :  { %v2051_v25 = vpack.c.bf16 %v2015_v35, %v2013_v6 }
 0x33d   :  { %v2052_v15 = vpack.c.bf16 %v2016_v8, %v2014_v22  ;;  %v1942_v52 = vpop.f32.mrb[88].mxu0  ;;  %v3112_v8 = vld [vmem:[#allocation2 + $0x18] sm:$0xff] }
 0x33e   :  { %v2813_v13 = vadd.f32 %v1942_v52, %v3853_v7  ;;  %v1944_v2 = vpop.f32.mrb[89].mxu0 }
 0x33f   :  { %v2814_v48 = vadd.f32 %v1944_v2, %v3857_v3  ;;  %v1946_v4 = vpop.f32.mrb[90].mxu0  ;;  %2328 = vmatprep.mubr.bf16.mxu1 %v2052_v15 }
 0x340   :  { %v2815_v23 = vadd.f32 %v1946_v4, %v3853_v7  ;;  %v1948_v26 = vpop.f32.mrb[91].mxu0  ;;  %2329 = vmatmul.mubr.bf16.gmra.mrb[148].mxu1 %v2051_v25  ;;  %v2017_v5 = vmax.f32 %v2813_v13, 0.0  ;;  %v3113_v4 = vld [vmem:[#allocation5 + $0x20] sm:$0xff] }
 0x341   :  { %v2816_v55 = vadd.f32 %v1948_v26, %v3857_v3  ;;  %v2018_v11 = vmax.f32 %v2814_v48, 0.0 }
 0x342   :  { %v2019_v31 = vmax.f32 %v2815_v23, 0.0 }
 0x343   :  { %v2020_v1 = vmax.f32 %v2816_v55, 0.0  ;;  %v3114_v55 = vld [vmem:[#allocation2 + $0x20] sm:$0xff] }
 0x344   :  { %v2053_v32 = vpack.c.bf16 %v2019_v31, %v2017_v5  ;;  %v3115_v31 = vld [vmem:[#allocation5 + $0x28] sm:$0xff] }
 0x345   :  { %v2054_v44 = vpack.c.bf16 %v2020_v1, %v2018_v11  ;;  %v1952_v40 = vpop.f32.mrb[92].mxu0 }
 0x346   :  { %v2817_v0 = vadd.f32 %v1952_v40, %v3853_v7  ;;  %v1954_v58 = vpop.f32.mrb[93].mxu0 }
 0x347   :  { %v2818_v34 = vadd.f32 %v1954_v58, %v3857_v3  ;;  %v1956_v41 = vpop.f32.mrb[94].mxu0  ;;  %2336 = vmatprep.mubr.bf16.mxu1 %v2054_v44  ;;  %v3116_v44 = vld [vmem:[#allocation2 + $0x28] sm:$0xff] }
 0x348   :  { %v2819_v42 = vadd.f32 %v1956_v41, %v3853_v7  ;;  %v1958_v45 = vpop.f32.mrb[95].mxu0  ;;  %2337 = vmatmul.mubr.bf16.gmra.mrb[152].mxu1 %v2053_v32  ;;  %v2021_v54 = vmax.f32 %v2817_v0, 0.0 }
 0x349   :  { %v2820_v53 = vadd.f32 %v1958_v45, %v3857_v3  ;;  %v2022_v46 = vmax.f32 %v2818_v34, 0.0  ;;  %v3117_v45 = vld [vmem:[#allocation5 + $0x30] sm:$0xff] }
 0x34a   :  { %v2023_v9 = vmax.f32 %v2819_v42, 0.0 }
 0x34b   :  { %v2024_v59 = vmax.f32 %v2820_v53, 0.0 }
 0x34c   :  { %v2055_v62 = vpack.c.bf16 %v2023_v9, %v2021_v54  ;;  %v3118_v9 = vld [vmem:[#allocation2 + $0x30] sm:$0xff] }
 0x34d   :  { %v2056_v56 = vpack.c.bf16 %v2024_v59, %v2022_v46  ;;  %v3119_v59 = vld [vmem:[#allocation5 + $0x38] sm:$0xff] }
 0x34f   :  { %2344 = vmatprep.mubr.bf16.mxu1 %v2056_v56 }
 0x350   :  { %2345 = vmatmul.mubr.bf16.gmra.mrb[156].mxu1 %v2055_v62 }
 0x3ab   :  { %v2629_v63 = vpop.f32.mrb[96].mxu1 }
 0x3ac   :  { %v2630_v19 = vpop.f32.mrb[97].mxu1 }
 0x3ad   :  { %v2631_v7 = vadd.f32 %v2630_v19, %v2629_v63  ;;  %v2632_v10 = vpop.f32.mrb[98].mxu1  ;;  %v3120_v19 = vld [vmem:[#allocation2 + $0x38] sm:$0xff] }
 0x3ae   :  { %v2633_v12 = vpop.f32.mrb[99].mxu1 }
 0x3af   :  { %v2227_v3 = vadd.f32 %v2631_v7, %v3926_v33  ;;  %v2634_v57 = vadd.f32 %v2633_v12, %v2632_v10 }
 0x3b1   :  { %v2353_v14 = vmul.f32 %v3105_v30, %v2227_v3  ;;  %v2230_v16 = vadd.f32 %v2634_v57, %v3926_v33 }
 0x3b3   :  { %v2385_v17 = vadd.f32 %v3106_v43, %v2353_v14  ;;  %v2354_v37 = vmul.f32 %v3107_v36, %v2230_v16  ;;  %v2635_v18 = vpop.f32.mrb[100].mxu1  ;;  %v3121_v14 = vld [vmem:[#allocation5 + $0x40] sm:$0xff] }
 0x3b4   :  { %v2636_v39 = vpop.f32.mrb[101].mxu1 }
 0x3b5   :  { %2417 = vst [vmem:[#allocation11] sm:$0xff] %v2385_v17  ;;  %v2386_v29 = vadd.f32 %v3108_v38, %v2354_v37  ;;  %v2637_v60 = vadd.f32 %v2636_v39, %v2635_v18  ;;  %v2638_v28 = vpop.f32.mrb[102].mxu1  ;;  %v3122_v17 = vld [vmem:[#allocation2 + $0x40] sm:$0xff]  ;;  %v3123_v37 = vld [vmem:[#allocation5 + $0x48] sm:$0xff] }
 0x3b6   :  { %v2639_v24 = vpop.f32.mrb[103].mxu1 }
 0x3b7   :  { %2418 = vst [vmem:[#allocation11 + $0x8] sm:$0xff] %v2386_v29  ;;  %v2235_v47 = vadd.f32 %v2637_v60, %v3926_v33  ;;  %v2640_v51 = vadd.f32 %v2639_v24, %v2638_v28  ;;  %v3124_v29 = vld [vmem:[#allocation2 + $0x48] sm:$0xff] }
 0x3b9   :  { %v2355_v20 = vmul.f32 %v3109_v49, %v2235_v47  ;;  %v2238_v61 = vadd.f32 %v2640_v51, %v3926_v33 }
 0x3bb   :  { %v2387_v21 = vadd.f32 %v3110_v50, %v2355_v20  ;;  %v2356_v6 = vmul.f32 %v3111_v27, %v2238_v61  ;;  %v2641_v35 = vpop.f32.mrb[104].mxu1  ;;  %v3125_v20 = vld [vmem:[#allocation5 + $0x50] sm:$0xff] }
 0x3bc   :  { %v2642_v22 = vpop.f32.mrb[105].mxu1 }
 0x3bd   :  { %2419 = vst [vmem:[#allocation11 + $0x10] sm:$0xff] %v2387_v21  ;;  %v2388_v25 = vadd.f32 %v3112_v8, %v2356_v6  ;;  %v2643_v15 = vadd.f32 %v2642_v22, %v2641_v35  ;;  %v2644_v52 = vpop.f32.mrb[106].mxu1  ;;  %v3126_v21 = vld [vmem:[#allocation2 + $0x50] sm:$0xff]  ;;  %v3127_v6 = vld [vmem:[#allocation5 + $0x58] sm:$0xff] }
 0x3be   :  { %v2645_v13 = vpop.f32.mrb[107].mxu1 }
 0x3bf   :  { %2420 = vst [vmem:[#allocation11 + $0x18] sm:$0xff] %v2388_v25  ;;  %v2243_v2 = vadd.f32 %v2643_v15, %v3926_v33  ;;  %v2646_v48 = vadd.f32 %v2645_v13, %v2644_v52  ;;  %v3128_v25 = vld [vmem:[#allocation2 + $0x58] sm:$0xff] }
 0x3c1   :  { %v2357_v23 = vmul.f32 %v3113_v4, %v2243_v2  ;;  %v2246_v26 = vadd.f32 %v2646_v48, %v3926_v33 }
 0x3c3   :  { %v2389_v5 = vadd.f32 %v3114_v55, %v2357_v23  ;;  %v2358_v11 = vmul.f32 %v3115_v31, %v2246_v26  ;;  %v2647_v1 = vpop.f32.mrb[108].mxu1  ;;  %v3129_v23 = vld [vmem:[#allocation5 + $0x60] sm:$0xff] }
 0x3c4   :  { %v2648_v32 = vpop.f32.mrb[109].mxu1 }
 0x3c5   :  { %2421 = vst [vmem:[#allocation11 + $0x20] sm:$0xff] %v2389_v5  ;;  %v2390_v40 = vadd.f32 %v3116_v44, %v2358_v11  ;;  %v2649_v0 = vadd.f32 %v2648_v32, %v2647_v1  ;;  %v2650_v58 = vpop.f32.mrb[110].mxu1  ;;  %v3130_v5 = vld [vmem:[#allocation2 + $0x60] sm:$0xff]  ;;  %v3131_v11 = vld [vmem:[#allocation5 + $0x68] sm:$0xff] }
 0x3c6   :  { %v2651_v34 = vpop.f32.mrb[111].mxu1 }
 0x3c7   :  { %2422 = vst [vmem:[#allocation11 + $0x28] sm:$0xff] %v2390_v40  ;;  %v2251_v41 = vadd.f32 %v2649_v0, %v3926_v33  ;;  %v2652_v42 = vadd.f32 %v2651_v34, %v2650_v58  ;;  %v3132_v40 = vld [vmem:[#allocation2 + $0x68] sm:$0xff] }
 0x3c9   :  { %v2359_v53 = vmul.f32 %v3117_v45, %v2251_v41  ;;  %v2254_v54 = vadd.f32 %v2652_v42, %v3926_v33 }
 0x3cb   :  { %v2391_v46 = vadd.f32 %v3118_v9, %v2359_v53  ;;  %v2360_v62 = vmul.f32 %v3119_v59, %v2254_v54  ;;  %v2653_v56 = vpop.f32.mrb[112].mxu1  ;;  %v3133_v53 = vld [vmem:[#allocation5 + $0x70] sm:$0xff] }
 0x3cc   :  { %v2654_v63 = vpop.f32.mrb[113].mxu1 }
 0x3cd   :  { %2423 = vst [vmem:[#allocation11 + $0x30] sm:$0xff] %v2391_v46  ;;  %v2392_v7 = vadd.f32 %v3120_v19, %v2360_v62  ;;  %v2655_v10 = vadd.f32 %v2654_v63, %v2653_v56  ;;  %v2656_v12 = vpop.f32.mrb[114].mxu1  ;;  %v3134_v46 = vld [vmem:[#allocation2 + $0x70] sm:$0xff]  ;;  %v3135_v62 = vld [vmem:[#allocation5 + $0x78] sm:$0xff] }
 0x3ce   :  { %v2657_v3 = vpop.f32.mrb[115].mxu1 }
 0x3cf   :  { %2424 = vst [vmem:[#allocation11 + $0x38] sm:$0xff] %v2392_v7  ;;  %v2259_v57 = vadd.f32 %v2655_v10, %v3926_v33  ;;  %v2658_v30 = vadd.f32 %v2657_v3, %v2656_v12  ;;  %v3136_v7 = vld [vmem:[#allocation2 + $0x78] sm:$0xff] }
 0x3d1   :  { %v2361_v16 = vmul.f32 %v3121_v14, %v2259_v57  ;;  %v2262_v43 = vadd.f32 %v2658_v30, %v3926_v33 }
 0x3d3   :  { %v2393_v36 = vadd.f32 %v3122_v17, %v2361_v16  ;;  %v2362_v18 = vmul.f32 %v3123_v37, %v2262_v43  ;;  %v2659_v39 = vpop.f32.mrb[116].mxu1  ;;  %v3137_v16 = vld [vmem:[#allocation5 + $0x80] sm:$0xff] }
 0x3d4   :  { %v2660_v38 = vpop.f32.mrb[117].mxu1 }
 0x3d5   :  { %2425 = vst [vmem:[#allocation11 + $0x40] sm:$0xff] %v2393_v36  ;;  %v2394_v60 = vadd.f32 %v3124_v29, %v2362_v18  ;;  %v2661_v28 = vadd.f32 %v2660_v38, %v2659_v39  ;;  %v2662_v24 = vpop.f32.mrb[118].mxu1  ;;  %v3138_v36 = vld [vmem:[#allocation2 + $0x80] sm:$0xff]  ;;  %v3139_v18 = vld [vmem:[#allocation5 + $0x88] sm:$0xff] }
 0x3d6   :  { %v2663_v47 = vpop.f32.mrb[119].mxu1 }
 0x3d7   :  { %2426 = vst [vmem:[#allocation11 + $0x48] sm:$0xff] %v2394_v60  ;;  %v2267_v51 = vadd.f32 %v2661_v28, %v3926_v33  ;;  %v2664_v49 = vadd.f32 %v2663_v47, %v2662_v24  ;;  %v3140_v60 = vld [vmem:[#allocation2 + $0x88] sm:$0xff] }
 0x3d9   :  { %v2363_v61 = vmul.f32 %v3125_v20, %v2267_v51  ;;  %v2270_v50 = vadd.f32 %v2664_v49, %v3926_v33 }
 0x3db   :  { %v2395_v27 = vadd.f32 %v3126_v21, %v2363_v61  ;;  %v2364_v35 = vmul.f32 %v3127_v6, %v2270_v50  ;;  %v2665_v22 = vpop.f32.mrb[120].mxu1  ;;  %v3141_v61 = vld [vmem:[#allocation5 + $0x90] sm:$0xff] }
 0x3dc   :  { %v2666_v8 = vpop.f32.mrb[121].mxu1 }
 0x3dd   :  { %2427 = vst [vmem:[#allocation11 + $0x50] sm:$0xff] %v2395_v27  ;;  %v2396_v15 = vadd.f32 %v3128_v25, %v2364_v35  ;;  %v2667_v52 = vadd.f32 %v2666_v8, %v2665_v22  ;;  %v2668_v13 = vpop.f32.mrb[122].mxu1  ;;  %v3142_v27 = vld [vmem:[#allocation2 + $0x90] sm:$0xff]  ;;  %v3143_v35 = vld [vmem:[#allocation5 + $0x98] sm:$0xff] }
 0x3de   :  { %v2669_v2 = vpop.f32.mrb[123].mxu1 }
 0x3df   :  { %2428 = vst [vmem:[#allocation11 + $0x58] sm:$0xff] %v2396_v15  ;;  %v2275_v48 = vadd.f32 %v2667_v52, %v3926_v33  ;;  %v2670_v4 = vadd.f32 %v2669_v2, %v2668_v13  ;;  %v3144_v15 = vld [vmem:[#allocation2 + $0x98] sm:$0xff] }
 0x3e1   :  { %v2365_v26 = vmul.f32 %v3129_v23, %v2275_v48  ;;  %v2278_v55 = vadd.f32 %v2670_v4, %v3926_v33 }
 0x3e3   :  { %v2397_v31 = vadd.f32 %v3130_v5, %v2365_v26  ;;  %v2366_v1 = vmul.f32 %v3131_v11, %v2278_v55  ;;  %v2671_v32 = vpop.f32.mrb[124].mxu1  ;;  %v3145_v26 = vld [vmem:[#allocation5 + $0xa0] sm:$0xff] }
 0x3e4   :  { %v2672_v44 = vpop.f32.mrb[125].mxu1 }
 0x3e5   :  { %2429 = vst [vmem:[#allocation11 + $0x60] sm:$0xff] %v2397_v31  ;;  %v2398_v0 = vadd.f32 %v3132_v40, %v2366_v1  ;;  %v2673_v58 = vadd.f32 %v2672_v44, %v2671_v32  ;;  %v2674_v34 = vpop.f32.mrb[126].mxu1  ;;  %v3146_v31 = vld [vmem:[#allocation2 + $0xa0] sm:$0xff]  ;;  %v3147_v1 = vld [vmem:[#allocation5 + $0xa8] sm:$0xff] }
 0x3e6   :  { %v2675_v41 = vpop.f32.mrb[127].mxu1 }
 0x3e7   :  { %2430 = vst [vmem:[#allocation11 + $0x68] sm:$0xff] %v2398_v0  ;;  %v2283_v42 = vadd.f32 %v2673_v58, %v3926_v33  ;;  %v2676_v45 = vadd.f32 %v2675_v41, %v2674_v34  ;;  %v3148_v0 = vld [vmem:[#allocation2 + $0xa8] sm:$0xff] }
 0x3e9   :  { %v2367_v54 = vmul.f32 %v3133_v53, %v2283_v42  ;;  %v2286_v9 = vadd.f32 %v2676_v45, %v3926_v33 }
 0x3eb   :  { %v2399_v59 = vadd.f32 %v3134_v46, %v2367_v54  ;;  %v2368_v56 = vmul.f32 %v3135_v62, %v2286_v9  ;;  %v2677_v63 = vpop.f32.mrb[128].mxu1  ;;  %v3149_v54 = vld [vmem:[#allocation5 + $0xb0] sm:$0xff] }
 0x3ec   :  { %v2678_v19 = vpop.f32.mrb[129].mxu1 }
 0x3ed   :  { %2431 = vst [vmem:[#allocation11 + $0x70] sm:$0xff] %v2399_v59  ;;  %v2400_v10 = vadd.f32 %v3136_v7, %v2368_v56  ;;  %v2679_v12 = vadd.f32 %v2678_v19, %v2677_v63  ;;  %v2680_v3 = vpop.f32.mrb[130].mxu1  ;;  %v3150_v59 = vld [vmem:[#allocation2 + $0xb0] sm:$0xff]  ;;  %v3151_v56 = vld [vmem:[#allocation5 + $0xb8] sm:$0xff] }
 0x3ee   :  { %v2681_v57 = vpop.f32.mrb[131].mxu1 }
 0x3ef   :  { %2432 = vst [vmem:[#allocation11 + $0x78] sm:$0xff] %v2400_v10  ;;  %v2291_v30 = vadd.f32 %v2679_v12, %v3926_v33  ;;  %v2682_v14 = vadd.f32 %v2681_v57, %v2680_v3  ;;  %v3152_v10 = vld [vmem:[#allocation2 + $0xb8] sm:$0xff] }
 0x3f1   :  { %v2369_v43 = vmul.f32 %v3137_v16, %v2291_v30  ;;  %v2294_v17 = vadd.f32 %v2682_v14, %v3926_v33 }
 0x3f3   :  { %v2401_v37 = vadd.f32 %v3138_v36, %v2369_v43  ;;  %v2370_v39 = vmul.f32 %v3139_v18, %v2294_v17  ;;  %v2683_v38 = vpop.f32.mrb[132].mxu1  ;;  %v3153_v43 = vld [vmem:[#allocation5 + $0xc0] sm:$0xff] }
 0x3f4   :  { %v2684_v29 = vpop.f32.mrb[133].mxu1 }
 0x3f5   :  { %2433 = vst [vmem:[#allocation11 + $0x80] sm:$0xff] %v2401_v37  ;;  %v2402_v28 = vadd.f32 %v3140_v60, %v2370_v39  ;;  %v2685_v24 = vadd.f32 %v2684_v29, %v2683_v38  ;;  %v2686_v47 = vpop.f32.mrb[134].mxu1  ;;  %v3154_v37 = vld [vmem:[#allocation2 + $0xc0] sm:$0xff]  ;;  %v3155_v39 = vld [vmem:[#allocation5 + $0xc8] sm:$0xff] }
 0x3f6   :  { %v2687_v51 = vpop.f32.mrb[135].mxu1 }
 0x3f7   :  { %2434 = vst [vmem:[#allocation11 + $0x88] sm:$0xff] %v2402_v28  ;;  %v2299_v49 = vadd.f32 %v2685_v24, %v3926_v33  ;;  %v2688_v20 = vadd.f32 %v2687_v51, %v2686_v47  ;;  %v3156_v28 = vld [vmem:[#allocation2 + $0xc8] sm:$0xff] }
 0x3f9   :  { %v2371_v50 = vmul.f32 %v3141_v61, %v2299_v49  ;;  %v2302_v21 = vadd.f32 %v2688_v20, %v3926_v33 }
 0x3fb   :  { %v2403_v6 = vadd.f32 %v3142_v27, %v2371_v50  ;;  %v2372_v22 = vmul.f32 %v3143_v35, %v2302_v21  ;;  %v2689_v8 = vpop.f32.mrb[136].mxu1  ;;  %v3157_v50 = vld [vmem:[#allocation5 + $0xd0] sm:$0xff] }
 0x3fc   :  { %v2690_v25 = vpop.f32.mrb[137].mxu1 }
 0x3fd   :  { %2435 = vst [vmem:[#allocation11 + $0x90] sm:$0xff] %v2403_v6  ;;  %v2404_v52 = vadd.f32 %v3144_v15, %v2372_v22  ;;  %v2691_v13 = vadd.f32 %v2690_v25, %v2689_v8  ;;  %v2692_v2 = vpop.f32.mrb[138].mxu1  ;;  %v3158_v6 = vld [vmem:[#allocation2 + $0xd0] sm:$0xff]  ;;  %v3159_v22 = vld [vmem:[#allocation5 + $0xd8] sm:$0xff] }
 0x3fe   :  { %v2693_v48 = vpop.f32.mrb[139].mxu1 }
 0x3ff   :  { %2436 = vst [vmem:[#allocation11 + $0x98] sm:$0xff] %v2404_v52  ;;  %v2307_v4 = vadd.f32 %v2691_v13, %v3926_v33  ;;  %v2694_v23 = vadd.f32 %v2693_v48, %v2692_v2  ;;  %v3160_v52 = vld [vmem:[#allocation2 + $0xd8] sm:$0xff] }
 0x401   :  { %v2373_v55 = vmul.f32 %v3145_v26, %v2307_v4  ;;  %v2310_v5 = vadd.f32 %v2694_v23, %v3926_v33 }
 0x403   :  { %v2405_v11 = vadd.f32 %v3146_v31, %v2373_v55  ;;  %v2374_v32 = vmul.f32 %v3147_v1, %v2310_v5  ;;  %v2695_v44 = vpop.f32.mrb[140].mxu1  ;;  %v3161_v55 = vld [vmem:[#allocation5 + $0xe0] sm:$0xff] }
 0x404   :  { %v2696_v40 = vpop.f32.mrb[141].mxu1 }
 0x405   :  { %2437 = vst [vmem:[#allocation11 + $0xa0] sm:$0xff] %v2405_v11  ;;  %v2406_v58 = vadd.f32 %v3148_v0, %v2374_v32  ;;  %v2697_v34 = vadd.f32 %v2696_v40, %v2695_v44  ;;  %v2698_v41 = vpop.f32.mrb[142].mxu1  ;;  %v3162_v11 = vld [vmem:[#allocation2 + $0xe0] sm:$0xff]  ;;  %v3163_v32 = vld [vmem:[#allocation5 + $0xe8] sm:$0xff] }
 0x406   :  { %v2699_v42 = vpop.f32.mrb[143].mxu1 }
 0x407   :  { %2438 = vst [vmem:[#allocation11 + $0xa8] sm:$0xff] %v2406_v58  ;;  %v2315_v45 = vadd.f32 %v2697_v34, %v3926_v33  ;;  %v2700_v53 = vadd.f32 %v2699_v42, %v2698_v41  ;;  %v3164_v58 = vld [vmem:[#allocation2 + $0xe8] sm:$0xff] }
 0x409   :  { %v2375_v9 = vmul.f32 %v3149_v54, %v2315_v45  ;;  %v2318_v46 = vadd.f32 %v2700_v53, %v3926_v33 }
 0x40b   :  { %v2407_v62 = vadd.f32 %v3150_v59, %v2375_v9  ;;  %v2376_v63 = vmul.f32 %v3151_v56, %v2318_v46  ;;  %v2701_v19 = vpop.f32.mrb[144].mxu1  ;;  %v3165_v9 = vld [vmem:[#allocation5 + $0xf0] sm:$0xff] }
 0x40c   :  { %v2702_v7 = vpop.f32.mrb[145].mxu1 }
 0x40d   :  { %2439 = vst [vmem:[#allocation11 + $0xb0] sm:$0xff] %v2407_v62  ;;  %v2408_v12 = vadd.f32 %v3152_v10, %v2376_v63  ;;  %v2703_v3 = vadd.f32 %v2702_v7, %v2701_v19  ;;  %v2704_v57 = vpop.f32.mrb[146].mxu1  ;;  %v3166_v62 = vld [vmem:[#allocation2 + $0xf0] sm:$0xff]  ;;  %v3167_v63 = vld [vmem:[#allocation5 + $0xf8] sm:$0xff] }
 0x40e   :  { %v2705_v30 = vpop.f32.mrb[147].mxu1  ;;  %v3168_v7 = vld [vmem:[#allocation2 + $0xf8] sm:$0xff] }
 0x40f   :  { %2440 = vst [vmem:[#allocation11 + $0xb8] sm:$0xff] %v2408_v12  ;;  %v2323_v14 = vadd.f32 %v2703_v3, %v3926_v33  ;;  %v2706_v16 = vadd.f32 %v2705_v30, %v2704_v57 }
 0x411   :  { %v2377_v17 = vmul.f32 %v3153_v43, %v2323_v14  ;;  %v2326_v36 = vadd.f32 %v2706_v16, %v3926_v33 }
 0x413   :  { %v2409_v18 = vadd.f32 %v3154_v37, %v2377_v17  ;;  %v2378_v38 = vmul.f32 %v3155_v39, %v2326_v36  ;;  %v2707_v29 = vpop.f32.mrb[148].mxu1 }
 0x414   :  { %v2708_v60 = vpop.f32.mrb[149].mxu1 }
 0x415   :  { %2441 = vst [vmem:[#allocation11 + $0xc0] sm:$0xff] %v2409_v18  ;;  %v2410_v24 = vadd.f32 %v3156_v28, %v2378_v38  ;;  %v2709_v47 = vadd.f32 %v2708_v60, %v2707_v29  ;;  %v2710_v51 = vpop.f32.mrb[150].mxu1 }
 0x416   :  { %v2711_v49 = vpop.f32.mrb[151].mxu1 }
 0x417   :  { %2442 = vst [vmem:[#allocation11 + $0xc8] sm:$0xff] %v2410_v24  ;;  %v2331_v20 = vadd.f32 %v2709_v47, %v3926_v33  ;;  %v2712_v61 = vadd.f32 %v2711_v49, %v2710_v51 }
 0x419   :  { %v2379_v21 = vmul.f32 %v3157_v50, %v2331_v20  ;;  %v2334_v27 = vadd.f32 %v2712_v61, %v3926_v33 }
 0x41b   :  { %v2411_v35 = vadd.f32 %v3158_v6, %v2379_v21  ;;  %v2380_v8 = vmul.f32 %v3159_v22, %v2334_v27  ;;  %v2713_v25 = vpop.f32.mrb[152].mxu1 }
 0x41c   :  { %v2714_v15 = vpop.f32.mrb[153].mxu1 }
 0x41d   :  { %2443 = vst [vmem:[#allocation11 + $0xd0] sm:$0xff] %v2411_v35  ;;  %v2412_v13 = vadd.f32 %v3160_v52, %v2380_v8  ;;  %v2715_v2 = vadd.f32 %v2714_v15, %v2713_v25  ;;  %v2716_v48 = vpop.f32.mrb[154].mxu1 }
 0x41e   :  { %v2717_v4 = vpop.f32.mrb[155].mxu1 }
 0x41f   :  { %2444 = vst [vmem:[#allocation11 + $0xd8] sm:$0xff] %v2412_v13  ;;  %v2339_v23 = vadd.f32 %v2715_v2, %v3926_v33  ;;  %v2718_v26 = vadd.f32 %v2717_v4, %v2716_v48 }
 0x421   :  { %v2381_v5 = vmul.f32 %v3161_v55, %v2339_v23  ;;  %v2342_v31 = vadd.f32 %v2718_v26, %v3926_v33 }
 0x423   :  { %v2413_v1 = vadd.f32 %v3162_v11, %v2381_v5  ;;  %v2382_v44 = vmul.f32 %v3163_v32, %v2342_v31  ;;  %v2719_v40 = vpop.f32.mrb[156].mxu1 }
 0x424   :  { %v2720_v0 = vpop.f32.mrb[157].mxu1 }
 0x425   :  { %2445 = vst [vmem:[#allocation11 + $0xe0] sm:$0xff] %v2413_v1  ;;  %v2414_v34 = vadd.f32 %v3164_v58, %v2382_v44  ;;  %v2721_v41 = vadd.f32 %v2720_v0, %v2719_v40  ;;  %v2722_v42 = vpop.f32.mrb[158].mxu1 }
 0x426   :  { %v2723_v45 = vpop.f32.mrb[159].mxu1 }
 0x427   :  { %2446 = vst [vmem:[#allocation11 + $0xe8] sm:$0xff] %v2414_v34  ;;  %v2347_v53 = vadd.f32 %v2721_v41, %v3926_v33  ;;  %v2724_v54 = vadd.f32 %v2723_v45, %v2722_v42 }
 0x429   :  { %v2383_v46 = vmul.f32 %v3165_v9, %v2347_v53  ;;  %v2350_v59 = vadd.f32 %v2724_v54, %v3926_v33 }
 0x42b   :  { %v2415_v56 = vadd.f32 %v3166_v62, %v2383_v46  ;;  %v2384_v19 = vmul.f32 %v3167_v63, %v2350_v59 }
 0x42d   :  { %2447 = vst [vmem:[#allocation11 + $0xf0] sm:$0xff] %v2415_v56  ;;  %v2416_v10 = vadd.f32 %v3168_v7, %v2384_v19 }
 0x42f   :  { %2448 = vst [vmem:[#allocation11 + $0xf8] sm:$0xff] %v2416_v10 }
 0x430   :  { %3290 = shalt.err (!%p3287_p2)
}
 0x431   :  { %s3291_s9 = scalar_lea.hbm %s3983_s8, 4096 }
 0x432   :  { %p3292_p3 = scmp.ne.s32.totalorder %s3983_s8, %s3291_s9  ;;  %p3295_p4 = scmp.lt.u32.totalorder %s3291_s9, %s3983_s8 }
 0x434   :  { %p3297_p5 = pnand %p3295_p4, %p3292_p3 }
 0x436   :  { %3300 = shalt.err (!%p3297_p5)
}
 0x437   :  { %2460 = dma.vmem_to_hbm [thread:$0]  %s2455_s29, 4096, %s3983_s8, [#allocation4], %s3311_s17, %s3311_s17, %s3312_s18  }
 0x438   :  { %3307 = dma.done.wait [#allocation4], 4096  }
 0x439   :  { %3308 = vsyncadd [#allocation4], 4294963200 }
 0x43a   :  { %2464 = vsyncpa [#allocation3], 1 }
 0x43b   :  { %2465 = vsyncpa [#allocation6], 1 }
 0x43c   :  { %2466 = vsyncpa [#allocation9], 1 }
 0x43d   :  { %2467 = vsyncpa [#allocation4], 1 }

</bundles_post_ra>
